<compile_context>
chip_gen: v5e
topology: v5e:2x2
jax: 0.10.0
libtpu: 0.0.40
codegen_flags: <defaults>
</compile_context>

<pallas_src>
import functools

import jax
import jax.numpy as jnp
from jax.experimental import pallas as pl
from jax.experimental.pallas import tpu as pltpu


def _round_up(x, m):
    return (x + m - 1) // m * m


def _lstm_fc_kernel(x_ref, wih_ref, whh_ref, b_ref, wfc_ref, bfc_ref, out_ref, *,
                    seq_len, batch, hidden_pad, num_outputs):
    """Full LSTM forward + FC in one kernel invocation (no grid).

    x_ref   : (T*B, Ip)   time-major, padded, flattened input
    wih_ref : (Ip, 4*Hp)  W_ih^T, per-gate padded, gate order [i|f|g|o]
    whh_ref : (Hp, 4*Hp)  W_hh^T, per-gate padded
    b_ref   : (1, 4*Hp)   b_ih + b_hh, per-gate padded
    wfc_ref : (O, Hp)     fc weight (row layout), H padded
    bfc_ref : (1, O)      fc bias
    out_ref : (B, O)
    """
    T, B, Hp = seq_len, batch, hidden_pad

    # ---- Phase 1: hoisted input projection — one big, well-shaped GEMM --------
    gates_x = (jnp.dot(x_ref[...], wih_ref[...],
                       preferred_element_type=jnp.float32)
               + b_ref[...])                                   # (T*B, 4*Hp)

    whh = whh_ref[...]                                          # load once, reuse

    # ---- Phase 2: serial recurrence (fully unrolled; T is small & static) -----
    h = jnp.zeros((B, Hp), jnp.float32)
    c = jnp.zeros((B, Hp), jnp.float32)
    for t in range(T):
        g = (gates_x[t * B:(t + 1) * B, :]                      # aligned row slice
             + jnp.dot(h, whh, preferred_element_type=jnp.float32))
        # Lane-aligned gate slices (Hp is a multiple of 128).
        i_g = jax.nn.sigmoid(g[:, 0 * Hp:1 * Hp])
        f_g = jax.nn.sigmoid(g[:, 1 * Hp:2 * Hp])
        g_g = jnp.tanh(g[:, 2 * Hp:3 * Hp])
        o_g = jax.nn.sigmoid(g[:, 3 * Hp:4 * Hp])
        c = f_g * c + i_g * g_g
        h = o_g * jnp.tanh(c)

    # ---- Phase 3: fused FC on the final hidden state ---------------------------
    if num_outputs == 1:
        # (B,Hp) * (1,Hp) -> VPU multiply + lane reduction (avoids 1-col MXU matmul).
        out = jnp.sum(h * wfc_ref[...], axis=-1, keepdims=True)
    else:
        out = jax.lax.dot_general(h, wfc_ref[...],
                                  (((1,), (1,)), ((), ())),
                                  preferred_element_type=jnp.float32)
    out_ref[...] = (out + bfc_ref[...]).astype(out_ref.dtype)


def lstm_model_forward(x_btf, w_ih, w_hh, b_ih, b_hh, w_fc, b_fc):
    """x_btf: (B, T, I) batch-first input (PyTorch convention).

    Returns (B, output_size), matching `fc(h_n[-1])` of the reference module.
    """
    B, T, I = x_btf.shape
    H = w_ih.shape[0] // 4
    O = w_fc.shape[0]
    Hp = _round_up(H, 128)
    Ip = _round_up(I, 128)

    # Time-major, pad feature dim, flatten to (T*B, Ip) for the hoisted GEMM.
    x_tbi = jnp.transpose(x_btf, (1, 0, 2))                     # (T, B, I)
    x2d = jnp.pad(x_tbi, ((0, 0), (0, 0), (0, Ip - I))).reshape(T * B, Ip)

    # Pad weights PER GATE so each gate block is Hp wide: columns [i|f|g|o].
    def pad_gate_w(w, in_dim, in_pad):                          # (4H, in) -> (in_pad, 4*Hp)
        w4 = w.reshape(4, H, in_dim)
        w4 = jnp.pad(w4, ((0, 0), (0, Hp - H), (0, in_pad - in_dim)))
        return jnp.transpose(w4, (2, 0, 1)).reshape(in_pad, 4 * Hp)

    wih_t = pad_gate_w(w_ih, I, Ip)                             # (Ip, 4*Hp)
    whh_t = pad_gate_w(w_hh, H, Hp)                             # (Hp, 4*Hp)
    bias = (b_ih + b_hh).reshape(4, H)
    bias = jnp.pad(bias, ((0, 0), (0, Hp - H))).reshape(1, 4 * Hp)
    wfc_p = jnp.pad(w_fc, ((0, 0), (0, Hp - H)))                # (O, Hp)
    bfc = b_fc.reshape(1, O)

    kernel = functools.partial(_lstm_fc_kernel, seq_len=T, batch=B,
                               hidden_pad=Hp, num_outputs=O)

    vmem = pl.BlockSpec(memory_space=pltpu.MemorySpace.VMEM)    # whole array in VMEM
    return pl.pallas_call(
        kernel,
        out_shape=jax.ShapeDtypeStruct((B, O), x_btf.dtype),
        in_specs=[vmem] * 6,
        out_specs=pl.BlockSpec(memory_space=pltpu.MemorySpace.VMEM),
        # TODO(synk): for large B on v7x, add a leading "parallel" batch grid axis
        # (or core_map over the 2-TC mesh) and bf16-cast weights at scale.
    )(x2d, wih_t, whh_t, bias, wfc_p, bfc)


def _reference_forward(x_btf, w_ih, w_hh, b_ih, b_hh, w_fc, b_fc):
    """Pure-JAX reference matching torch.nn.LSTM (gate order i, f, g, o)."""
    B, T, I = x_btf.shape
    H = w_hh.shape[1]
    h = jnp.zeros((B, H), jnp.float32)
    c = jnp.zeros((B, H), jnp.float32)
    for t in range(T):
        g = x_btf[:, t, :] @ w_ih.T + b_ih + h @ w_hh.T + b_hh
        i_g = jax.nn.sigmoid(g[:, 0 * H:1 * H])
        f_g = jax.nn.sigmoid(g[:, 1 * H:2 * H])
        g_g = jnp.tanh(g[:, 2 * H:3 * H])
        o_g = jax.nn.sigmoid(g[:, 3 * H:4 * H])
        c = f_g * c + i_g * g_g
        h = o_g * jnp.tanh(c)
    return h @ w_fc.T + b_fc


if __name__ == "__main__":
    # Small deterministic shapes consistent with the module:
    # batch=8, seq=8, input_size=12 (num features), hidden_size=64, output_size=1
    B, T, I, H, O = 8, 8, 12, 64, 1

    key = jax.random.PRNGKey(0)
    kx, k1, k2, k3, k4, k5, k6 = jax.random.split(key, 7)
    bound = 1.0 / jnp.sqrt(H)

    x = jax.random.normal(kx, (B, T, I), jnp.float32)
    w_ih = jax.random.uniform(k1, (4 * H, I), jnp.float32, -bound, bound)
    w_hh = jax.random.uniform(k2, (4 * H, H), jnp.float32, -bound, bound)
    b_ih = jax.random.uniform(k3, (4 * H,), jnp.float32, -bound, bound)
    b_hh = jax.random.uniform(k4, (4 * H,), jnp.float32, -bound, bound)
    w_fc = jax.random.uniform(k5, (O, H), jnp.float32, -bound, bound)
    b_fc = jax.random.uniform(k6, (O,), jnp.float32, -bound, bound)

    out = lstm_model_forward(x, w_ih, w_hh, b_ih, b_hh, w_fc, b_fc)
    out = jax.block_until_ready(out)

    ref = _reference_forward(x, w_ih, w_hh, b_ih, b_hh, w_fc, b_fc)
    assert out.shape == (B, O), out.shape
    assert jnp.allclose(out, ref, atol=1e-5, rtol=1e-5), (out, ref)

    print("KERNEL_OK")
</pallas_src>

<mosaic_0001>
module attributes {stable_mosaic.version = 11 : i64} {
  func.func @_lstm_fc_kernel(%arg0: memref<64x128xf32, #tpu.memory_space<vmem>>, %arg1: memref<128x512xf32, #tpu.memory_space<vmem>>, %arg2: memref<128x512xf32, #tpu.memory_space<vmem>>, %arg3: memref<1x512xf32, #tpu.memory_space<vmem>>, %arg4: memref<1x128xf32, #tpu.memory_space<vmem>>, %arg5: memref<1x1xf32, #tpu.memory_space<vmem>>, %arg6: memref<8x1xf32, #tpu.memory_space<vmem>>) attributes {dimension_semantics = [], scalar_prefetch = 0 : i64, scratch_operands = 0 : i64, tpu.core_type = #tpu.core_type<tc>} {
    %c0 = arith.constant 0 : index
    %c0_0 = arith.constant 0 : index
    %0 = vector.load %arg0[%c0, %c0_0] : memref<64x128xf32, #tpu.memory_space<vmem>>, vector<64x128xf32>
    %c0_1 = arith.constant 0 : index
    %c0_2 = arith.constant 0 : index
    %1 = vector.load %arg1[%c0_1, %c0_2] : memref<128x512xf32, #tpu.memory_space<vmem>>, vector<128x512xf32>
    %cst = arith.constant dense<0.000000e+00> : vector<64x512xf32>
    %2 = tpu.matmul %0, %1, %cst {dimension_numbers = #tpu.dot_dimension_numbers<[1], [0], [0], [1], [0, 0, 1, 1], [], []>} : vector<64x128xf32>, vector<128x512xf32>, vector<64x512xf32> -> vector<64x512xf32>
    %c0_3 = arith.constant 0 : index
    %c0_4 = arith.constant 0 : index
    %3 = vector.load %arg3[%c0_3, %c0_4] : memref<1x512xf32, #tpu.memory_space<vmem>>, vector<1x512xf32>
    %4 = vector.broadcast %3 : vector<1x512xf32> to vector<64x512xf32>
    %5 = arith.addf %2, %4 : vector<64x512xf32>
    %c0_5 = arith.constant 0 : index
    %c0_6 = arith.constant 0 : index
    %6 = vector.load %arg2[%c0_5, %c0_6] : memref<128x512xf32, #tpu.memory_space<vmem>>, vector<128x512xf32>
    %cst_7 = arith.constant 0.000000e+00 : f32
    %7 = vector.broadcast %cst_7 : f32 to vector<8x128xf32>
    %cst_8 = arith.constant 0.000000e+00 : f32
    %8 = vector.broadcast %cst_8 : f32 to vector<8x128xf32>
    %9 = vector.extract_strided_slice %5 {offsets = [0, 0], sizes = [8, 512], strides = [1, 1]} : vector<64x512xf32> to vector<8x512xf32>
    %cst_9 = arith.constant dense<0.000000e+00> : vector<8x512xf32>
    %10 = tpu.matmul %7, %6, %cst_9 {dimension_numbers = #tpu.dot_dimension_numbers<[1], [0], [0], [1], [0, 0, 1, 1], [], []>} : vector<8x128xf32>, vector<128x512xf32>, vector<8x512xf32> -> vector<8x512xf32>
    %11 = arith.addf %9, %10 : vector<8x512xf32>
    %12 = vector.extract_strided_slice %11 {offsets = [0, 0], sizes = [8, 128], strides = [1, 1]} : vector<8x512xf32> to vector<8x128xf32>
    %13 = arith.negf %12 : vector<8x128xf32>
    %14 = math.exp %13 : vector<8x128xf32>
    %cst_10 = arith.constant 1.000000e+00 : f32
    %15 = vector.broadcast %cst_10 : f32 to vector<8x128xf32>
    %16 = arith.addf %15, %14 : vector<8x128xf32>
    %17 = arith.divf %15, %16 : vector<8x128xf32>
    %18 = vector.extract_strided_slice %11 {offsets = [0, 128], sizes = [8, 128], strides = [1, 1]} : vector<8x512xf32> to vector<8x128xf32>
    %19 = arith.negf %18 : vector<8x128xf32>
    %20 = math.exp %19 : vector<8x128xf32>
    %cst_11 = arith.constant 1.000000e+00 : f32
    %21 = vector.broadcast %cst_11 : f32 to vector<8x128xf32>
    %22 = arith.addf %21, %20 : vector<8x128xf32>
    %23 = arith.divf %21, %22 : vector<8x128xf32>
    %24 = vector.extract_strided_slice %11 {offsets = [0, 256], sizes = [8, 128], strides = [1, 1]} : vector<8x512xf32> to vector<8x128xf32>
    %25 = math.tanh %24 : vector<8x128xf32>
    %26 = vector.extract_strided_slice %11 {offsets = [0, 384], sizes = [8, 128], strides = [1, 1]} : vector<8x512xf32> to vector<8x128xf32>
    %27 = arith.negf %26 : vector<8x128xf32>
    %28 = math.exp %27 : vector<8x128xf32>
    %cst_12 = arith.constant 1.000000e+00 : f32
    %29 = vector.broadcast %cst_12 : f32 to vector<8x128xf32>
    %30 = arith.addf %29, %28 : vector<8x128xf32>
    %31 = arith.divf %29, %30 : vector<8x128xf32>
    %32 = arith.mulf %23, %8 : vector<8x128xf32>
    %33 = arith.mulf %17, %25 : vector<8x128xf32>
    %34 = arith.addf %32, %33 : vector<8x128xf32>
    %35 = math.tanh %34 : vector<8x128xf32>
    %36 = arith.mulf %31, %35 : vector<8x128xf32>
    %37 = vector.extract_strided_slice %5 {offsets = [8, 0], sizes = [8, 512], strides = [1, 1]} : vector<64x512xf32> to vector<8x512xf32>
    %cst_13 = arith.constant dense<0.000000e+00> : vector<8x512xf32>
    %38 = tpu.matmul %36, %6, %cst_13 {dimension_numbers = #tpu.dot_dimension_numbers<[1], [0], [0], [1], [0, 0, 1, 1], [], []>} : vector<8x128xf32>, vector<128x512xf32>, vector<8x512xf32> -> vector<8x512xf32>
    %39 = arith.addf %37, %38 : vector<8x512xf32>
    %40 = vector.extract_strided_slice %39 {offsets = [0, 0], sizes = [8, 128], strides = [1, 1]} : vector<8x512xf32> to vector<8x128xf32>
    %41 = arith.negf %40 : vector<8x128xf32>
    %42 = math.exp %41 : vector<8x128xf32>
    %cst_14 = arith.constant 1.000000e+00 : f32
    %43 = vector.broadcast %cst_14 : f32 to vector<8x128xf32>
    %44 = arith.addf %43, %42 : vector<8x128xf32>
    %45 = arith.divf %43, %44 : vector<8x128xf32>
    %46 = vector.extract_strided_slice %39 {offsets = [0, 128], sizes = [8, 128], strides = [1, 1]} : vector<8x512xf32> to vector<8x128xf32>
    %47 = arith.negf %46 : vector<8x128xf32>
    %48 = math.exp %47 : vector<8x128xf32>
    %cst_15 = arith.constant 1.000000e+00 : f32
    %49 = vector.broadcast %cst_15 : f32 to vector<8x128xf32>
    %50 = arith.addf %49, %48 : vector<8x128xf32>
    %51 = arith.divf %49, %50 : vector<8x128xf32>
    %52 = vector.extract_strided_slice %39 {offsets = [0, 256], sizes = [8, 128], strides = [1, 1]} : vector<8x512xf32> to vector<8x128xf32>
    %53 = math.tanh %52 : vector<8x128xf32>
    %54 = vector.extract_strided_slice %39 {offsets = [0, 384], sizes = [8, 128], strides = [1, 1]} : vector<8x512xf32> to vector<8x128xf32>
    %55 = arith.negf %54 : vector<8x128xf32>
    %56 = math.exp %55 : vector<8x128xf32>
    %cst_16 = arith.constant 1.000000e+00 : f32
    %57 = vector.broadcast %cst_16 : f32 to vector<8x128xf32>
    %58 = arith.addf %57, %56 : vector<8x128xf32>
    %59 = arith.divf %57, %58 : vector<8x128xf32>
    %60 = arith.mulf %51, %34 : vector<8x128xf32>
    %61 = arith.mulf %45, %53 : vector<8x128xf32>
    %62 = arith.addf %60, %61 : vector<8x128xf32>
    %63 = math.tanh %62 : vector<8x128xf32>
    %64 = arith.mulf %59, %63 : vector<8x128xf32>
    %65 = vector.extract_strided_slice %5 {offsets = [16, 0], sizes = [8, 512], strides = [1, 1]} : vector<64x512xf32> to vector<8x512xf32>
    %cst_17 = arith.constant dense<0.000000e+00> : vector<8x512xf32>
    %66 = tpu.matmul %64, %6, %cst_17 {dimension_numbers = #tpu.dot_dimension_numbers<[1], [0], [0], [1], [0, 0, 1, 1], [], []>} : vector<8x128xf32>, vector<128x512xf32>, vector<8x512xf32> -> vector<8x512xf32>
    %67 = arith.addf %65, %66 : vector<8x512xf32>
    %68 = vector.extract_strided_slice %67 {offsets = [0, 0], sizes = [8, 128], strides = [1, 1]} : vector<8x512xf32> to vector<8x128xf32>
    %69 = arith.negf %68 : vector<8x128xf32>
    %70 = math.exp %69 : vector<8x128xf32>
    %cst_18 = arith.constant 1.000000e+00 : f32
    %71 = vector.broadcast %cst_18 : f32 to vector<8x128xf32>
    %72 = arith.addf %71, %70 : vector<8x128xf32>
    %73 = arith.divf %71, %72 : vector<8x128xf32>
    %74 = vector.extract_strided_slice %67 {offsets = [0, 128], sizes = [8, 128], strides = [1, 1]} : vector<8x512xf32> to vector<8x128xf32>
    %75 = arith.negf %74 : vector<8x128xf32>
    %76 = math.exp %75 : vector<8x128xf32>
    %cst_19 = arith.constant 1.000000e+00 : f32
    %77 = vector.broadcast %cst_19 : f32 to vector<8x128xf32>
    %78 = arith.addf %77, %76 : vector<8x128xf32>
    %79 = arith.divf %77, %78 : vector<8x128xf32>
    %80 = vector.extract_strided_slice %67 {offsets = [0, 256], sizes = [8, 128], strides = [1, 1]} : vector<8x512xf32> to vector<8x128xf32>
    %81 = math.tanh %80 : vector<8x128xf32>
    %82 = vector.extract_strided_slice %67 {offsets = [0, 384], sizes = [8, 128], strides = [1, 1]} : vector<8x512xf32> to vector<8x128xf32>
    %83 = arith.negf %82 : vector<8x128xf32>
    %84 = math.exp %83 : vector<8x128xf32>
    %cst_20 = arith.constant 1.000000e+00 : f32
    %85 = vector.broadcast %cst_20 : f32 to vector<8x128xf32>
    %86 = arith.addf %85, %84 : vector<8x128xf32>
    %87 = arith.divf %85, %86 : vector<8x128xf32>
    %88 = arith.mulf %79, %62 : vector<8x128xf32>
    %89 = arith.mulf %73, %81 : vector<8x128xf32>
    %90 = arith.addf %88, %89 : vector<8x128xf32>
    %91 = math.tanh %90 : vector<8x128xf32>
    %92 = arith.mulf %87, %91 : vector<8x128xf32>
    %93 = vector.extract_strided_slice %5 {offsets = [24, 0], sizes = [8, 512], strides = [1, 1]} : vector<64x512xf32> to vector<8x512xf32>
    %cst_21 = arith.constant dense<0.000000e+00> : vector<8x512xf32>
    %94 = tpu.matmul %92, %6, %cst_21 {dimension_numbers = #tpu.dot_dimension_numbers<[1], [0], [0], [1], [0, 0, 1, 1], [], []>} : vector<8x128xf32>, vector<128x512xf32>, vector<8x512xf32> -> vector<8x512xf32>
    %95 = arith.addf %93, %94 : vector<8x512xf32>
    %96 = vector.extract_strided_slice %95 {offsets = [0, 0], sizes = [8, 128], strides = [1, 1]} : vector<8x512xf32> to vector<8x128xf32>
    %97 = arith.negf %96 : vector<8x128xf32>
    %98 = math.exp %97 : vector<8x128xf32>
    %cst_22 = arith.constant 1.000000e+00 : f32
    %99 = vector.broadcast %cst_22 : f32 to vector<8x128xf32>
    %100 = arith.addf %99, %98 : vector<8x128xf32>
    %101 = arith.divf %99, %100 : vector<8x128xf32>
    %102 = vector.extract_strided_slice %95 {offsets = [0, 128], sizes = [8, 128], strides = [1, 1]} : vector<8x512xf32> to vector<8x128xf32>
    %103 = arith.negf %102 : vector<8x128xf32>
    %104 = math.exp %103 : vector<8x128xf32>
    %cst_23 = arith.constant 1.000000e+00 : f32
    %105 = vector.broadcast %cst_23 : f32 to vector<8x128xf32>
    %106 = arith.addf %105, %104 : vector<8x128xf32>
    %107 = arith.divf %105, %106 : vector<8x128xf32>
    %108 = vector.extract_strided_slice %95 {offsets = [0, 256], sizes = [8, 128], strides = [1, 1]} : vector<8x512xf32> to vector<8x128xf32>
    %109 = math.tanh %108 : vector<8x128xf32>
    %110 = vector.extract_strided_slice %95 {offsets = [0, 384], sizes = [8, 128], strides = [1, 1]} : vector<8x512xf32> to vector<8x128xf32>
    %111 = arith.negf %110 : vector<8x128xf32>
    %112 = math.exp %111 : vector<8x128xf32>
    %cst_24 = arith.constant 1.000000e+00 : f32
    %113 = vector.broadcast %cst_24 : f32 to vector<8x128xf32>
    %114 = arith.addf %113, %112 : vector<8x128xf32>
    %115 = arith.divf %113, %114 : vector<8x128xf32>
    %116 = arith.mulf %107, %90 : vector<8x128xf32>
    %117 = arith.mulf %101, %109 : vector<8x128xf32>
    %118 = arith.addf %116, %117 : vector<8x128xf32>
    %119 = math.tanh %118 : vector<8x128xf32>
    %120 = arith.mulf %115, %119 : vector<8x128xf32>
    %121 = vector.extract_strided_slice %5 {offsets = [32, 0], sizes = [8, 512], strides = [1, 1]} : vector<64x512xf32> to vector<8x512xf32>
    %cst_25 = arith.constant dense<0.000000e+00> : vector<8x512xf32>
    %122 = tpu.matmul %120, %6, %cst_25 {dimension_numbers = #tpu.dot_dimension_numbers<[1], [0], [0], [1], [0, 0, 1, 1], [], []>} : vector<8x128xf32>, vector<128x512xf32>, vector<8x512xf32> -> vector<8x512xf32>
    %123 = arith.addf %121, %122 : vector<8x512xf32>
    %124 = vector.extract_strided_slice %123 {offsets = [0, 0], sizes = [8, 128], strides = [1, 1]} : vector<8x512xf32> to vector<8x128xf32>
    %125 = arith.negf %124 : vector<8x128xf32>
    %126 = math.exp %125 : vector<8x128xf32>
    %cst_26 = arith.constant 1.000000e+00 : f32
    %127 = vector.broadcast %cst_26 : f32 to vector<8x128xf32>
    %128 = arith.addf %127, %126 : vector<8x128xf32>
    %129 = arith.divf %127, %128 : vector<8x128xf32>
    %130 = vector.extract_strided_slice %123 {offsets = [0, 128], sizes = [8, 128], strides = [1, 1]} : vector<8x512xf32> to vector<8x128xf32>
    %131 = arith.negf %130 : vector<8x128xf32>
    %132 = math.exp %131 : vector<8x128xf32>
    %cst_27 = arith.constant 1.000000e+00 : f32
    %133 = vector.broadcast %cst_27 : f32 to vector<8x128xf32>
    %134 = arith.addf %133, %132 : vector<8x128xf32>
    %135 = arith.divf %133, %134 : vector<8x128xf32>
    %136 = vector.extract_strided_slice %123 {offsets = [0, 256], sizes = [8, 128], strides = [1, 1]} : vector<8x512xf32> to vector<8x128xf32>
    %137 = math.tanh %136 : vector<8x128xf32>
    %138 = vector.extract_strided_slice %123 {offsets = [0, 384], sizes = [8, 128], strides = [1, 1]} : vector<8x512xf32> to vector<8x128xf32>
    %139 = arith.negf %138 : vector<8x128xf32>
    %140 = math.exp %139 : vector<8x128xf32>
    %cst_28 = arith.constant 1.000000e+00 : f32
    %141 = vector.broadcast %cst_28 : f32 to vector<8x128xf32>
    %142 = arith.addf %141, %140 : vector<8x128xf32>
    %143 = arith.divf %141, %142 : vector<8x128xf32>
    %144 = arith.mulf %135, %118 : vector<8x128xf32>
    %145 = arith.mulf %129, %137 : vector<8x128xf32>
    %146 = arith.addf %144, %145 : vector<8x128xf32>
    %147 = math.tanh %146 : vector<8x128xf32>
    %148 = arith.mulf %143, %147 : vector<8x128xf32>
    %149 = vector.extract_strided_slice %5 {offsets = [40, 0], sizes = [8, 512], strides = [1, 1]} : vector<64x512xf32> to vector<8x512xf32>
    %cst_29 = arith.constant dense<0.000000e+00> : vector<8x512xf32>
    %150 = tpu.matmul %148, %6, %cst_29 {dimension_numbers = #tpu.dot_dimension_numbers<[1], [0], [0], [1], [0, 0, 1, 1], [], []>} : vector<8x128xf32>, vector<128x512xf32>, vector<8x512xf32> -> vector<8x512xf32>
    %151 = arith.addf %149, %150 : vector<8x512xf32>
    %152 = vector.extract_strided_slice %151 {offsets = [0, 0], sizes = [8, 128], strides = [1, 1]} : vector<8x512xf32> to vector<8x128xf32>
    %153 = arith.negf %152 : vector<8x128xf32>
    %154 = math.exp %153 : vector<8x128xf32>
    %cst_30 = arith.constant 1.000000e+00 : f32
    %155 = vector.broadcast %cst_30 : f32 to vector<8x128xf32>
    %156 = arith.addf %155, %154 : vector<8x128xf32>
    %157 = arith.divf %155, %156 : vector<8x128xf32>
    %158 = vector.extract_strided_slice %151 {offsets = [0, 128], sizes = [8, 128], strides = [1, 1]} : vector<8x512xf32> to vector<8x128xf32>
    %159 = arith.negf %158 : vector<8x128xf32>
    %160 = math.exp %159 : vector<8x128xf32>
    %cst_31 = arith.constant 1.000000e+00 : f32
    %161 = vector.broadcast %cst_31 : f32 to vector<8x128xf32>
    %162 = arith.addf %161, %160 : vector<8x128xf32>
    %163 = arith.divf %161, %162 : vector<8x128xf32>
    %164 = vector.extract_strided_slice %151 {offsets = [0, 256], sizes = [8, 128], strides = [1, 1]} : vector<8x512xf32> to vector<8x128xf32>
    %165 = math.tanh %164 : vector<8x128xf32>
    %166 = vector.extract_strided_slice %151 {offsets = [0, 384], sizes = [8, 128], strides = [1, 1]} : vector<8x512xf32> to vector<8x128xf32>
    %167 = arith.negf %166 : vector<8x128xf32>
    %168 = math.exp %167 : vector<8x128xf32>
    %cst_32 = arith.constant 1.000000e+00 : f32
    %169 = vector.broadcast %cst_32 : f32 to vector<8x128xf32>
    %170 = arith.addf %169, %168 : vector<8x128xf32>
    %171 = arith.divf %169, %170 : vector<8x128xf32>
    %172 = arith.mulf %163, %146 : vector<8x128xf32>
    %173 = arith.mulf %157, %165 : vector<8x128xf32>
    %174 = arith.addf %172, %173 : vector<8x128xf32>
    %175 = math.tanh %174 : vector<8x128xf32>
    %176 = arith.mulf %171, %175 : vector<8x128xf32>
    %177 = vector.extract_strided_slice %5 {offsets = [48, 0], sizes = [8, 512], strides = [1, 1]} : vector<64x512xf32> to vector<8x512xf32>
    %cst_33 = arith.constant dense<0.000000e+00> : vector<8x512xf32>
    %178 = tpu.matmul %176, %6, %cst_33 {dimension_numbers = #tpu.dot_dimension_numbers<[1], [0], [0], [1], [0, 0, 1, 1], [], []>} : vector<8x128xf32>, vector<128x512xf32>, vector<8x512xf32> -> vector<8x512xf32>
    %179 = arith.addf %177, %178 : vector<8x512xf32>
    %180 = vector.extract_strided_slice %179 {offsets = [0, 0], sizes = [8, 128], strides = [1, 1]} : vector<8x512xf32> to vector<8x128xf32>
    %181 = arith.negf %180 : vector<8x128xf32>
    %182 = math.exp %181 : vector<8x128xf32>
    %cst_34 = arith.constant 1.000000e+00 : f32
    %183 = vector.broadcast %cst_34 : f32 to vector<8x128xf32>
    %184 = arith.addf %183, %182 : vector<8x128xf32>
    %185 = arith.divf %183, %184 : vector<8x128xf32>
    %186 = vector.extract_strided_slice %179 {offsets = [0, 128], sizes = [8, 128], strides = [1, 1]} : vector<8x512xf32> to vector<8x128xf32>
    %187 = arith.negf %186 : vector<8x128xf32>
    %188 = math.exp %187 : vector<8x128xf32>
    %cst_35 = arith.constant 1.000000e+00 : f32
    %189 = vector.broadcast %cst_35 : f32 to vector<8x128xf32>
    %190 = arith.addf %189, %188 : vector<8x128xf32>
    %191 = arith.divf %189, %190 : vector<8x128xf32>
    %192 = vector.extract_strided_slice %179 {offsets = [0, 256], sizes = [8, 128], strides = [1, 1]} : vector<8x512xf32> to vector<8x128xf32>
    %193 = math.tanh %192 : vector<8x128xf32>
    %194 = vector.extract_strided_slice %179 {offsets = [0, 384], sizes = [8, 128], strides = [1, 1]} : vector<8x512xf32> to vector<8x128xf32>
    %195 = arith.negf %194 : vector<8x128xf32>
    %196 = math.exp %195 : vector<8x128xf32>
    %cst_36 = arith.constant 1.000000e+00 : f32
    %197 = vector.broadcast %cst_36 : f32 to vector<8x128xf32>
    %198 = arith.addf %197, %196 : vector<8x128xf32>
    %199 = arith.divf %197, %198 : vector<8x128xf32>
    %200 = arith.mulf %191, %174 : vector<8x128xf32>
    %201 = arith.mulf %185, %193 : vector<8x128xf32>
    %202 = arith.addf %200, %201 : vector<8x128xf32>
    %203 = math.tanh %202 : vector<8x128xf32>
    %204 = arith.mulf %199, %203 : vector<8x128xf32>
    %205 = vector.extract_strided_slice %5 {offsets = [56, 0], sizes = [8, 512], strides = [1, 1]} : vector<64x512xf32> to vector<8x512xf32>
    %cst_37 = arith.constant dense<0.000000e+00> : vector<8x512xf32>
    %206 = tpu.matmul %204, %6, %cst_37 {dimension_numbers = #tpu.dot_dimension_numbers<[1], [0], [0], [1], [0, 0, 1, 1], [], []>} : vector<8x128xf32>, vector<128x512xf32>, vector<8x512xf32> -> vector<8x512xf32>
    %207 = arith.addf %205, %206 : vector<8x512xf32>
    %208 = vector.extract_strided_slice %207 {offsets = [0, 0], sizes = [8, 128], strides = [1, 1]} : vector<8x512xf32> to vector<8x128xf32>
    %209 = arith.negf %208 : vector<8x128xf32>
    %210 = math.exp %209 : vector<8x128xf32>
    %cst_38 = arith.constant 1.000000e+00 : f32
    %211 = vector.broadcast %cst_38 : f32 to vector<8x128xf32>
    %212 = arith.addf %211, %210 : vector<8x128xf32>
    %213 = arith.divf %211, %212 : vector<8x128xf32>
    %214 = vector.extract_strided_slice %207 {offsets = [0, 128], sizes = [8, 128], strides = [1, 1]} : vector<8x512xf32> to vector<8x128xf32>
    %215 = arith.negf %214 : vector<8x128xf32>
    %216 = math.exp %215 : vector<8x128xf32>
    %cst_39 = arith.constant 1.000000e+00 : f32
    %217 = vector.broadcast %cst_39 : f32 to vector<8x128xf32>
    %218 = arith.addf %217, %216 : vector<8x128xf32>
    %219 = arith.divf %217, %218 : vector<8x128xf32>
    %220 = vector.extract_strided_slice %207 {offsets = [0, 256], sizes = [8, 128], strides = [1, 1]} : vector<8x512xf32> to vector<8x128xf32>
    %221 = math.tanh %220 : vector<8x128xf32>
    %222 = vector.extract_strided_slice %207 {offsets = [0, 384], sizes = [8, 128], strides = [1, 1]} : vector<8x512xf32> to vector<8x128xf32>
    %223 = arith.negf %222 : vector<8x128xf32>
    %224 = math.exp %223 : vector<8x128xf32>
    %cst_40 = arith.constant 1.000000e+00 : f32
    %225 = vector.broadcast %cst_40 : f32 to vector<8x128xf32>
    %226 = arith.addf %225, %224 : vector<8x128xf32>
    %227 = arith.divf %225, %226 : vector<8x128xf32>
    %228 = arith.mulf %219, %202 : vector<8x128xf32>
    %229 = arith.mulf %213, %221 : vector<8x128xf32>
    %230 = arith.addf %228, %229 : vector<8x128xf32>
    %231 = math.tanh %230 : vector<8x128xf32>
    %232 = arith.mulf %227, %231 : vector<8x128xf32>
    %c0_41 = arith.constant 0 : index
    %c0_42 = arith.constant 0 : index
    %233 = vector.load %arg4[%c0_41, %c0_42] : memref<1x128xf32, #tpu.memory_space<vmem>>, vector<1x128xf32>
    %234 = vector.broadcast %233 : vector<1x128xf32> to vector<8x128xf32>
    %235 = arith.mulf %232, %234 : vector<8x128xf32>
    %cst_43 = arith.constant dense<0.000000e+00> : vector<8xf32>
    %236 = vector.multi_reduction <add>, %235, %cst_43 [1] : vector<8x128xf32> to vector<8xf32>
    %237 = vector.shape_cast %236 : vector<8xf32> to vector<8x1xf32>
    %c0_44 = arith.constant 0 : index
    %c0_45 = arith.constant 0 : index
    %238 = vector.load %arg5[%c0_44, %c0_45] : memref<1x1xf32, #tpu.memory_space<vmem>>, vector<1x1xf32>
    %239 = vector.broadcast %238 : vector<1x1xf32> to vector<8x1xf32>
    %240 = arith.addf %237, %239 : vector<8x1xf32>
    %c0_46 = arith.constant 0 : index
    %c0_47 = arith.constant 0 : index
    %241 = vector.load %arg6[%c0_46, %c0_47] : memref<8x1xf32, #tpu.memory_space<vmem>>, vector<8x1xf32>
    tpu.vector_store %arg6[%c0_46, %c0_47], %240 {strides = array<i32>} : memref<8x1xf32, #tpu.memory_space<vmem>>, vector<8x1xf32>,
    return
  }
}

</mosaic_0001>

<bundles_post_ra>
// kernel: tpu_custom_call.1
= control target key start
LH: loop header
LB: loop body
LE: loop exit
PB: predicated region body
PF: predicated region fallthrough
CT: control target
= control target key end

     0   :  { %s2840_s0 = inlined_call_operand.hbm [shape: f32[64,128], index: 0, kind: input, shape index: {}]   ;;  %s2841_s1 = inlined_call_operand.hbm [shape: f32[128,512], index: 1, kind: input, shape index: {}]   ;;  %s2842_s2 = inlined_call_operand.hbm [shape: f32[128,512], index: 2, kind: input, shape index: {}]   ;;  %s2843_s3 = inlined_call_operand.vmem [shape: f32[1,512], index: 3, kind: input, shape index: {}]   ;;  %s2844_s4 = inlined_call_operand.vmem [shape: f32[1,128], index: 4, kind: input, shape index: {}]   ;;  %s2845_s5 = inlined_call_operand.<no memory space> [shape: f32[1,1], index: 5, kind: input, shape index: {}]   ;;  %s2846_s6 = inlined_call_operand.vmem [shape: f32[8,1], index: 6, kind: output, shape index: {}]  }
   0x1   :  { %v11_v0 = vstv %s2845_s5 }
   0x2   :  { %12 = vst [vmem:[#allocation2] sm:$0x1] %v11_v0 }
   0x3   :  { %13 = vsyncpa [#allocation4], 0 }
   0x4   :  { %14 = vsyncpa [#allocation6], 0  ;;  %s32_s25 = sshll.u32 %s2841_s1, 4  ;;  %s1880_s26 = smov [#allocation5]   ;;  %s33_s25 = int_to_ptr.hbm [resolvable:$true] %s32_s25 }
   0x5   :  { %s34_s27 = sshll.u32 %s1880_s26, 4  ;;  %s19_s30 = sshll.u32 %s2840_s0, 4  ;;  %s35_s27 = int_to_ptr.vmem [resolvable:$true] %s34_s27  ;;  %s20_s30 = int_to_ptr.hbm [resolvable:$true] %s19_s30 }
   0x6   :  { %s1881_s7 = smov 512   ;;  %s1882_s8 = smov 32  }
   0x7   :  { %40 = dma.hbm_to_vmem [thread:$0]  %s33_s25, 8192, %s35_s27, [#allocation6], %s1881_s7, %s1881_s7, %s1882_s8  }
   0x8   :  { %s1883_s5 = smov [#allocation3]   ;;  %s1884_s10 = smov 128  }
   0x9   :  { %s21_s9 = sshll.u32 %s1883_s5, 4  ;;  %s1885_s11 = smov 8   ;;  %s22_s9 = int_to_ptr.vmem [resolvable:$true] %s21_s9 }
   0xa   :  { %27 = dma.hbm_to_vmem [thread:$0]  %s20_s30, 1024, %s22_s9, [#allocation4], %s1884_s10, %s1884_s10, %s1885_s11  }
   0xb   :  { %s45_s13 = sshll.u32 %s2842_s2, 4  ;;  %s1886_s14 = smov [#allocation7]   ;;  %s46_s13 = int_to_ptr.hbm [resolvable:$true] %s45_s13 }
   0xc   :  { %s47_s15 = sshll.u32 %s1886_s14, 4  ;;  %s48_s15 = int_to_ptr.vmem [resolvable:$true] %s47_s15 }
   0xd   :  { %53 = dma.hbm_to_vmem [thread:$0]  %s46_s13, 8192, %s48_s15, [#allocation6], %s1881_s7, %s1881_s7, %s1882_s8  }
   0xe   :  { %1876 = dma.done.wait [#allocation4], 1024  }
   0xf   :  { %1877 = vsyncadd [#allocation4], 4294966272 }
  0x10   :  { %1878 = dma.done.wait [#allocation6], 16384  }
  0x11   :  { %1879 = vsyncadd [#allocation6], 4294950912  ;;  %v140_v1 = vld [vmem:[#allocation5 + $0x1e0] sm:$0xff]  ;;  %v141_v2 = vld [vmem:[#allocation5 + $0x1e8] sm:$0xff] }
  0x12   :  { %v142_v3 = vld [vmem:[#allocation5 + $0x1f0] sm:$0xff]  ;;  %154 = vmatpush.msra.mxu0 %v140_v1  ;;  %195 = vmatpush.msra.mxu1 %v141_v2  ;;  %v143_v4 = vld [vmem:[#allocation5 + $0x1f8] sm:$0xff]  ;;  %v136_v5 = vld [vmem:[#allocation5 + $0x1c0] sm:$0xff] }
  0x13   :  { %v137_v6 = vld [vmem:[#allocation5 + $0x1c8] sm:$0xff]  ;;  %236 = vmatpush.msra.mxu2 %v142_v3  ;;  %277 = vmatpush.msra.mxu3 %v143_v4  ;;  %v138_v7 = vld [vmem:[#allocation5 + $0x1d0] sm:$0xff]  ;;  %v139_v8 = vld [vmem:[#allocation5 + $0x1d8] sm:$0xff] }
  0x14   :  { %v132_v9 = vld [vmem:[#allocation5 + $0x1a0] sm:$0xff]  ;;  %155 = vmatpush.msra.mxu0 %v136_v5  ;;  %196 = vmatpush.msra.mxu1 %v137_v6  ;;  %v133_v10 = vld [vmem:[#allocation5 + $0x1a8] sm:$0xff]  ;;  %v134_v11 = vld [vmem:[#allocation5 + $0x1b0] sm:$0xff] }
  0x15   :  { %v135_v12 = vld [vmem:[#allocation5 + $0x1b8] sm:$0xff]  ;;  %237 = vmatpush.msra.mxu2 %v138_v7  ;;  %278 = vmatpush.msra.mxu3 %v139_v8  ;;  %v128_v13 = vld [vmem:[#allocation5 + $0x180] sm:$0xff]  ;;  %v129_v14 = vld [vmem:[#allocation5 + $0x188] sm:$0xff] }
  0x16   :  { %156 = vmatpush.msra.mxu0 %v132_v9  ;;  %197 = vmatpush.msra.mxu1 %v133_v10  ;;  %v130_v15 = vld [vmem:[#allocation5 + $0x190] sm:$0xff]  ;;  %v131_v16 = vld [vmem:[#allocation5 + $0x198] sm:$0xff]  ;;  %v124_v17 = vld [vmem:[#allocation5 + $0x160] sm:$0xff] }
  0x17   :  { %238 = vmatpush.msra.mxu2 %v134_v11  ;;  %279 = vmatpush.msra.mxu3 %v135_v12  ;;  %v125_v18 = vld [vmem:[#allocation5 + $0x168] sm:$0xff]  ;;  %v126_v19 = vld [vmem:[#allocation5 + $0x170] sm:$0xff]  ;;  %v127_v20 = vld [vmem:[#allocation5 + $0x178] sm:$0xff] }
  0x18   :  { %157 = vmatpush.msra.mxu0 %v128_v13  ;;  %198 = vmatpush.msra.mxu1 %v129_v14  ;;  %v120_v21 = vld [vmem:[#allocation5 + $0x140] sm:$0xff]  ;;  %v121_v22 = vld [vmem:[#allocation5 + $0x148] sm:$0xff]  ;;  %v122_v23 = vld [vmem:[#allocation5 + $0x150] sm:$0xff] }
  0x19   :  { %239 = vmatpush.msra.mxu2 %v130_v15  ;;  %280 = vmatpush.msra.mxu3 %v131_v16  ;;  %v123_v24 = vld [vmem:[#allocation5 + $0x158] sm:$0xff]  ;;  %v116_v25 = vld [vmem:[#allocation5 + $0x120] sm:$0xff]  ;;  %v117_v26 = vld [vmem:[#allocation5 + $0x128] sm:$0xff] }
  0x1a   :  { %158 = vmatpush.msra.mxu0 %v124_v17  ;;  %199 = vmatpush.msra.mxu1 %v125_v18  ;;  %v118_v27 = vld [vmem:[#allocation5 + $0x130] sm:$0xff]  ;;  %v119_v28 = vld [vmem:[#allocation5 + $0x138] sm:$0xff]  ;;  %v112_v29 = vld [vmem:[#allocation5 + $0x100] sm:$0xff] }
  0x1b   :  { %240 = vmatpush.msra.mxu2 %v126_v19  ;;  %281 = vmatpush.msra.mxu3 %v127_v20  ;;  %v113_v30 = vld [vmem:[#allocation5 + $0x108] sm:$0xff]  ;;  %v114_v31 = vld [vmem:[#allocation5 + $0x110] sm:$0xff]  ;;  %v115_v32 = vld [vmem:[#allocation5 + $0x118] sm:$0xff] }
  0x1c   :  { %159 = vmatpush.msra.mxu0 %v120_v21  ;;  %200 = vmatpush.msra.mxu1 %v121_v22  ;;  %v108_v33 = vld [vmem:[#allocation5 + $0xe0] sm:$0xff]  ;;  %v109_v34 = vld [vmem:[#allocation5 + $0xe8] sm:$0xff]  ;;  %v110_v35 = vld [vmem:[#allocation5 + $0xf0] sm:$0xff] }
  0x1d   :  { %241 = vmatpush.msra.mxu2 %v122_v23  ;;  %282 = vmatpush.msra.mxu3 %v123_v24  ;;  %v111_v36 = vld [vmem:[#allocation5 + $0xf8] sm:$0xff]  ;;  %v104_v37 = vld [vmem:[#allocation5 + $0xc0] sm:$0xff]  ;;  %v105_v38 = vld [vmem:[#allocation5 + $0xc8] sm:$0xff] }
  0x1e   :  { %160 = vmatpush.msra.mxu0 %v116_v25  ;;  %201 = vmatpush.msra.mxu1 %v117_v26  ;;  %v106_v39 = vld [vmem:[#allocation5 + $0xd0] sm:$0xff]  ;;  %v107_v40 = vld [vmem:[#allocation5 + $0xd8] sm:$0xff]  ;;  %v100_v41 = vld [vmem:[#allocation5 + $0xa0] sm:$0xff] }
  0x1f   :  { %242 = vmatpush.msra.mxu2 %v118_v27  ;;  %283 = vmatpush.msra.mxu3 %v119_v28  ;;  %v101_v42 = vld [vmem:[#allocation5 + $0xa8] sm:$0xff]  ;;  %v102_v43 = vld [vmem:[#allocation5 + $0xb0] sm:$0xff]  ;;  %v103_v44 = vld [vmem:[#allocation5 + $0xb8] sm:$0xff] }
  0x20   :  { %161 = vmatpush.msra.mxu0 %v112_v29  ;;  %202 = vmatpush.msra.mxu1 %v113_v30  ;;  %v96_v45 = vld [vmem:[#allocation5 + $0x80] sm:$0xff]  ;;  %v97_v46 = vld [vmem:[#allocation5 + $0x88] sm:$0xff]  ;;  %v98_v47 = vld [vmem:[#allocation5 + $0x90] sm:$0xff] }
  0x21   :  { %243 = vmatpush.msra.mxu2 %v114_v31  ;;  %284 = vmatpush.msra.mxu3 %v115_v32  ;;  %v99_v48 = vld [vmem:[#allocation5 + $0x98] sm:$0xff]  ;;  %v92_v49 = vld [vmem:[#allocation5 + $0x60] sm:$0xff]  ;;  %v93_v50 = vld [vmem:[#allocation5 + $0x68] sm:$0xff] }
  0x22   :  { %162 = vmatpush.msra.mxu0 %v108_v33  ;;  %203 = vmatpush.msra.mxu1 %v109_v34  ;;  %v94_v51 = vld [vmem:[#allocation5 + $0x70] sm:$0xff]  ;;  %v95_v52 = vld [vmem:[#allocation5 + $0x78] sm:$0xff]  ;;  %v88_v53 = vld [vmem:[#allocation5 + $0x40] sm:$0xff] }
  0x23   :  { %244 = vmatpush.msra.mxu2 %v110_v35  ;;  %285 = vmatpush.msra.mxu3 %v111_v36  ;;  %v89_v54 = vld [vmem:[#allocation5 + $0x48] sm:$0xff]  ;;  %v90_v55 = vld [vmem:[#allocation5 + $0x50] sm:$0xff]  ;;  %v91_v56 = vld [vmem:[#allocation5 + $0x58] sm:$0xff] }
  0x24   :  { %163 = vmatpush.msra.mxu0 %v104_v37  ;;  %204 = vmatpush.msra.mxu1 %v105_v38  ;;  %v84_v57 = vld [vmem:[#allocation5 + $0x20] sm:$0xff]  ;;  %v85_v58 = vld [vmem:[#allocation5 + $0x28] sm:$0xff]  ;;  %v86_v59 = vld [vmem:[#allocation5 + $0x30] sm:$0xff] }
  0x25   :  { %245 = vmatpush.msra.mxu2 %v106_v39  ;;  %286 = vmatpush.msra.mxu3 %v107_v40  ;;  %v87_v60 = vld [vmem:[#allocation5 + $0x38] sm:$0xff]  ;;  %v80_v61 = vld [vmem:[#allocation5] sm:$0xff]  ;;  %v81_v62 = vld [vmem:[#allocation5 + $0x8] sm:$0xff] }
  0x26   :  { %164 = vmatpush.msra.mxu0 %v100_v41  ;;  %205 = vmatpush.msra.mxu1 %v101_v42  ;;  %v82_v63 = vld [vmem:[#allocation5 + $0x10] sm:$0xff]  ;;  %v83_v0 = vld [vmem:[#allocation5 + $0x18] sm:$0xff]  ;;  %v72_v1 = vld [vmem:[#allocation3] sm:$0xff] }
  0x27   :  { %246 = vmatpush.msra.mxu2 %v102_v43  ;;  %287 = vmatpush.msra.mxu3 %v103_v44  ;;  %v1935_v2 = vld [vmem:[#allocation7 + $0x1e0] sm:$0xff]  ;;  %v1937_v3 = vld [vmem:[#allocation7 + $0x1e8] sm:$0xff]  ;;  %v1939_v4 = vld [vmem:[#allocation7 + $0x1f8] sm:$0xff] }
  0x28   :  { %165 = vmatpush.msra.mxu0 %v96_v45  ;;  %206 = vmatpush.msra.mxu1 %v97_v46  ;;  %v1941_v5 = vld [vmem:[#allocation7 + $0x1f0] sm:$0xff]  ;;  %v1943_v6 = vld [vmem:[#allocation7 + $0x1c0] sm:$0xff]  ;;  %v1945_v7 = vld [vmem:[#allocation7 + $0x1c8] sm:$0xff] }
  0x29   :  { %247 = vmatpush.msra.mxu2 %v98_v47  ;;  %288 = vmatpush.msra.mxu3 %v99_v48  ;;  %v1949_v8 = vld [vmem:[#allocation7 + $0x1d8] sm:$0xff]  ;;  %v1951_v9 = vld [vmem:[#allocation7 + $0x1d0] sm:$0xff]  ;;  %v1954_v10 = vld [vmem:[#allocation7 + $0x1a0] sm:$0xff] }
  0x2a   :  { %166 = vmatpush.msra.mxu0 %v92_v49  ;;  %207 = vmatpush.msra.mxu1 %v93_v50  ;;  %v1956_v11 = vld [vmem:[#allocation7 + $0x1a8] sm:$0xff]  ;;  %v1961_v12 = vld [vmem:[#allocation7 + $0x1b8] sm:$0xff]  ;;  %v1963_v13 = vld [vmem:[#allocation7 + $0x1b0] sm:$0xff] }
  0x2b   :  { %248 = vmatpush.msra.mxu2 %v94_v51  ;;  %289 = vmatpush.msra.mxu3 %v95_v52  ;;  %v73_v14 = vld [vmem:[#allocation3 + $0x8] sm:$0xff]  ;;  %v1969_v15 = vld [vmem:[#allocation7 + $0x180] sm:$0xff]  ;;  %v1975_v17 = vld [vmem:[#allocation7 + $0x198] sm:$0xff] }
  0x2c   :  { %167 = vmatpush.msra.mxu0 %v88_v53  ;;  %208 = vmatpush.msra.mxu1 %v89_v54  ;;  %v1971_v16 = vld [vmem:[#allocation7 + $0x188] sm:$0xff]  ;;  %v1977_v18 = vld [vmem:[#allocation7 + $0x190] sm:$0xff]  ;;  %v1979_v19 = vld [vmem:[#allocation7 + $0x160] sm:$0xff] }
  0x2d   :  { %249 = vmatpush.msra.mxu2 %v90_v55  ;;  %290 = vmatpush.msra.mxu3 %v91_v56  ;;  %v1981_v20 = vld [vmem:[#allocation7 + $0x168] sm:$0xff]  ;;  %v1985_v21 = vld [vmem:[#allocation7 + $0x178] sm:$0xff]  ;;  %v1987_v22 = vld [vmem:[#allocation7 + $0x170] sm:$0xff] }
  0x2e   :  { %168 = vmatpush.msra.mxu0 %v84_v57  ;;  %209 = vmatpush.msra.mxu1 %v85_v58  ;;  %v1990_v23 = vld [vmem:[#allocation7 + $0x140] sm:$0xff]  ;;  %v1992_v24 = vld [vmem:[#allocation7 + $0x148] sm:$0xff]  ;;  %v1997_v25 = vld [vmem:[#allocation7 + $0x158] sm:$0xff] }
  0x2f   :  { %250 = vmatpush.msra.mxu2 %v86_v59  ;;  %291 = vmatpush.msra.mxu3 %v87_v60  ;;  %v1999_v26 = vld [vmem:[#allocation7 + $0x150] sm:$0xff]  ;;  %v2005_v28 = vld [vmem:[#allocation7 + $0x120] sm:$0xff]  ;;  %v2007_v29 = vld [vmem:[#allocation7 + $0x128] sm:$0xff] }
  0x30   :  { %169 = vmatpush.msra.mxu0 %v80_v61  ;;  %210 = vmatpush.msra.mxu1 %v81_v62  ;;  %v74_v27 = vld [vmem:[#allocation3 + $0x10] sm:$0xff]  ;;  %v2011_v30 = vld [vmem:[#allocation7 + $0x138] sm:$0xff]  ;;  %v2015_v32 = vld [vmem:[#allocation7 + $0x100] sm:$0xff] }
  0x31   :  { %251 = vmatpush.msra.mxu2 %v82_v63  ;;  %292 = vmatpush.msra.mxu3 %v83_v0  ;;  %v2013_v31 = vld [vmem:[#allocation7 + $0x130] sm:$0xff]  ;;  %v2017_v33 = vld [vmem:[#allocation7 + $0x108] sm:$0xff]  ;;  %v2021_v34 = vld [vmem:[#allocation7 + $0x118] sm:$0xff] }
  0x32   :  { %170 = vmatmul.f32.vlgmr.msra.gmra.mxu0 %v72_v1  ;;  %211 = vmatmul.f32.vlgmr.msra.gmra.mxu1 %v72_v1  ;;  %v2023_v35 = vld [vmem:[#allocation7 + $0x110] sm:$0xff]  ;;  %v2026_v36 = vld [vmem:[#allocation7 + $0xe0] sm:$0xff]  ;;  %v2028_v37 = vld [vmem:[#allocation7 + $0xe8] sm:$0xff] }
  0x33   :  { %252 = vmatmul.f32.vlgmr.msra.gmra.mxu2 %v72_v1  ;;  %293 = vmatmul.f32.vlgmr.msra.gmra.mxu3 %v72_v1  ;;  %v2033_v38 = vld [vmem:[#allocation7 + $0xf8] sm:$0xff]  ;;  %v2035_v39 = vld [vmem:[#allocation7 + $0xf0] sm:$0xff]  ;;  %v2041_v41 = vld [vmem:[#allocation7 + $0xc0] sm:$0xff] }
  0x34   :  { %382 = vmatpush.msrb.mxu0 %v1935_v2  ;;  %402 = vmatpush.msrb.mxu1 %v1937_v3  ;;  %v75_v40 = vld [vmem:[#allocation3 + $0x18] sm:$0xff]  ;;  %v2043_v42 = vld [vmem:[#allocation7 + $0xc8] sm:$0xff]  ;;  %v2049_v44 = vld [vmem:[#allocation7 + $0xd0] sm:$0xff] }
  0x35   :  { %442 = vmatpush.msrb.mxu3 %v1939_v4  ;;  %422 = vmatpush.msrb.mxu2 %v1941_v5  ;;  %v2047_v43 = vld [vmem:[#allocation7 + $0xd8] sm:$0xff]  ;;  %2935 = vst [vmem:[#allocation11_spill] sm:$0xff] %v2049_v44  ;;  %v2051_v45 = vld [vmem:[#allocation7 + $0xa0] sm:$0xff]  ;;  %v2053_v46 = vld [vmem:[#allocation7 + $0xa8] sm:$0xff] }
  0x36   :  { %383 = vmatpush.msrb.mxu0 %v1943_v6  ;;  %403 = vmatpush.msrb.mxu1 %v1945_v7  ;;  %2934 = vst [vmem:[#allocation10_spill] sm:$0xff] %v2047_v43  ;;  %v2057_v47 = vld [vmem:[#allocation7 + $0xb8] sm:$0xff]  ;;  %v2059_v48 = vld [vmem:[#allocation7 + $0xb0] sm:$0xff]  ;;  %v2062_v49 = vld [vmem:[#allocation7 + $0x80] sm:$0xff] }
  0x37   :  { %443 = vmatpush.msrb.mxu3 %v1949_v8  ;;  %423 = vmatpush.msrb.mxu2 %v1951_v9  ;;  %2936 = vst [vmem:[#allocation12_spill] sm:$0xff] %v2051_v45  ;;  %v2064_v50 = vld [vmem:[#allocation7 + $0x88] sm:$0xff]  ;;  %v2069_v51 = vld [vmem:[#allocation7 + $0x98] sm:$0xff]  ;;  %v2071_v52 = vld [vmem:[#allocation7 + $0x90] sm:$0xff] }
  0x38   :  { %384 = vmatpush.msrb.mxu0 %v1954_v10  ;;  %404 = vmatpush.msrb.mxu1 %v1956_v11  ;;  %2937 = vst [vmem:[#allocation13_spill] sm:$0xff] %v2053_v46  ;;  %v76_v53 = vld [vmem:[#allocation3 + $0x20] sm:$0xff]  ;;  %v2079_v55 = vld [vmem:[#allocation7 + $0x68] sm:$0xff]  ;;  %v2083_v56 = vld [vmem:[#allocation7 + $0x78] sm:$0xff] }
  0x39   :  { %444 = vmatpush.msrb.mxu3 %v1961_v12  ;;  %424 = vmatpush.msrb.mxu2 %v1963_v13  ;;  %2938 = vst [vmem:[#allocation14_spill] sm:$0xff] %v2057_v47  ;;  %v2077_v54 = vld [vmem:[#allocation7 + $0x60] sm:$0xff]  ;;  %v2085_v57 = vld [vmem:[#allocation7 + $0x70] sm:$0xff]  ;;  %v2089_v59 = vld [vmem:[#allocation7 + $0x48] sm:$0xff] }
  0x3a   :  { %173 = vmatmul.f32.gmra.mxu0 %v73_v14  ;;  %214 = vmatmul.f32.gmra.mxu1 %v73_v14  ;;  %2939 = vst [vmem:[#allocation15_spill] sm:$0xff] %v2059_v48  ;;  %v2087_v58 = vld [vmem:[#allocation7 + $0x40] sm:$0xff]  ;;  %v2093_v60 = vld [vmem:[#allocation7 + $0x58] sm:$0xff]  ;;  %v2095_v61 = vld [vmem:[#allocation7 + $0x50] sm:$0xff] }
  0x3b   :  { %255 = vmatmul.f32.gmra.mxu2 %v73_v14  ;;  %296 = vmatmul.f32.gmra.mxu3 %v73_v14  ;;  %2940 = vst [vmem:[#allocation16_spill] sm:$0xff] %v2062_v49  ;;  %v2098_v62 = vld [vmem:[#allocation7 + $0x20] sm:$0xff]  ;;  %v2100_v63 = vld [vmem:[#allocation7 + $0x28] sm:$0xff]  ;;  %v2105_v0 = vld [vmem:[#allocation7 + $0x30] sm:$0xff] }
  0x3c   :  { %385 = vmatpush.msrb.mxu0 %v1969_v15  ;;  %405 = vmatpush.msrb.mxu1 %v1971_v16  ;;  %2941 = vst [vmem:[#allocation17_spill] sm:$0xff] %v2064_v50  ;;  %v2107_v1 = vld [vmem:[#allocation7 + $0x38] sm:$0xff]  ;;  %v77_v14 = vld [vmem:[#allocation3 + $0x28] sm:$0xff] }
  0x3d   :  { %445 = vmatpush.msrb.mxu3 %v1975_v17  ;;  %425 = vmatpush.msrb.mxu2 %v1977_v18  ;;  %2942 = vst [vmem:[#allocation18_spill] sm:$0xff] %v2069_v51 }
  0x3e   :  { %386 = vmatpush.msrb.mxu0 %v1979_v19  ;;  %406 = vmatpush.msrb.mxu1 %v1981_v20  ;;  %2943 = vst [vmem:[#allocation19_spill] sm:$0xff] %v2071_v52 }
  0x3f   :  { %446 = vmatpush.msrb.mxu3 %v1985_v21  ;;  %426 = vmatpush.msrb.mxu2 %v1987_v22  ;;  %2944 = vst [vmem:[#allocation20_spill] sm:$0xff] %v2077_v54 }
  0x40   :  { %387 = vmatpush.msrb.mxu0 %v1990_v23  ;;  %407 = vmatpush.msrb.mxu1 %v1992_v24  ;;  %2945 = vst [vmem:[#allocation21_spill] sm:$0xff] %v2079_v55 }
  0x41   :  { %447 = vmatpush.msrb.mxu3 %v1997_v25  ;;  %427 = vmatpush.msrb.mxu2 %v1999_v26  ;;  %2946 = vst [vmem:[#allocation22_spill] sm:$0xff] %v2083_v56 }
  0x42   :  { %176 = vmatmul.f32.gmra.mxu0 %v74_v27  ;;  %217 = vmatmul.f32.gmra.mxu1 %v74_v27  ;;  %2947 = vst [vmem:[#allocation23_spill] sm:$0xff] %v2085_v57 }
  0x43   :  { %258 = vmatmul.f32.gmra.mxu2 %v74_v27  ;;  %299 = vmatmul.f32.gmra.mxu3 %v74_v27  ;;  %2948 = vst [vmem:[#allocation24_spill] sm:$0xff] %v2087_v58  ;;  %v2113_v27 = vld [vmem:[#allocation7] sm:$0xff] }
  0x44   :  { %388 = vmatpush.msrb.mxu0 %v2005_v28  ;;  %408 = vmatpush.msrb.mxu1 %v2007_v29  ;;  %2949 = vst [vmem:[#allocation25_spill] sm:$0xff] %v2089_v59 }
  0x45   :  { %448 = vmatpush.msrb.mxu3 %v2011_v30  ;;  %428 = vmatpush.msrb.mxu2 %v2013_v31  ;;  %2950 = vst [vmem:[#allocation26_spill] sm:$0xff] %v2093_v60 }
  0x46   :  { %389 = vmatpush.msrb.mxu0 %v2015_v32  ;;  %409 = vmatpush.msrb.mxu1 %v2017_v33  ;;  %2951 = vst [vmem:[#allocation27_spill] sm:$0xff] %v2095_v61 }
  0x47   :  { %449 = vmatpush.msrb.mxu3 %v2021_v34  ;;  %429 = vmatpush.msrb.mxu2 %v2023_v35  ;;  %2952 = vst [vmem:[#allocation28_spill] sm:$0xff] %v2098_v62 }
  0x48   :  { %390 = vmatpush.msrb.mxu0 %v2026_v36  ;;  %410 = vmatpush.msrb.mxu1 %v2028_v37  ;;  %2953 = vst [vmem:[#allocation29_spill] sm:$0xff] %v2100_v63 }
  0x49   :  { %450 = vmatpush.msrb.mxu3 %v2033_v38  ;;  %430 = vmatpush.msrb.mxu2 %v2035_v39  ;;  %2954 = vst [vmem:[#allocation30_spill] sm:$0xff] %v2105_v0 }
  0x4a   :  { %179 = vmatmul.f32.gmra.mxu0 %v75_v40  ;;  %220 = vmatmul.f32.gmra.mxu1 %v75_v40  ;;  %2955 = vst [vmem:[#allocation31_spill] sm:$0xff] %v2107_v1 }
  0x4b   :  { %261 = vmatmul.f32.gmra.mxu2 %v75_v40  ;;  %302 = vmatmul.f32.gmra.mxu3 %v75_v40  ;;  %2956 = vst [vmem:[#allocation32_spill] sm:$0xff] %v2113_v27  ;;  %v2115_v40 = vld [vmem:[#allocation7 + $0x8] sm:$0xff] }
  0x4c   :  { %391 = vmatpush.msrb.mxu0 %v2041_v41  ;;  %411 = vmatpush.msrb.mxu1 %v2043_v42  ;;  %2957 = vst [vmem:[#allocation33_spill] sm:$0xff] %v2115_v40 }
  0x4d   :  { %451 = vmatpush.msrb.mxu3 %v2047_v43  ;;  %431 = vmatpush.msrb.mxu2 %v2049_v44 }
  0x4e   :  { %392 = vmatpush.msrb.mxu0 %v2051_v45  ;;  %412 = vmatpush.msrb.mxu1 %v2053_v46 }
  0x4f   :  { %452 = vmatpush.msrb.mxu3 %v2057_v47  ;;  %432 = vmatpush.msrb.mxu2 %v2059_v48 }
  0x50   :  { %393 = vmatpush.msrb.mxu0 %v2062_v49  ;;  %413 = vmatpush.msrb.mxu1 %v2064_v50 }
  0x51   :  { %453 = vmatpush.msrb.mxu3 %v2069_v51  ;;  %433 = vmatpush.msrb.mxu2 %v2071_v52 }
  0x52   :  { %182 = vmatmul.f32.gmra.mxu0 %v76_v53  ;;  %223 = vmatmul.f32.gmra.mxu1 %v76_v53 }
  0x53   :  { %264 = vmatmul.f32.gmra.mxu2 %v76_v53  ;;  %305 = vmatmul.f32.gmra.mxu3 %v76_v53  ;;  %v2119_v53 = vld [vmem:[#allocation7 + $0x10] sm:$0xff] }
  0x54   :  { %394 = vmatpush.msrb.mxu0 %v2077_v54  ;;  %414 = vmatpush.msrb.mxu1 %v2079_v55  ;;  %2958 = vst [vmem:[#allocation34_spill] sm:$0xff] %v2119_v53 }
  0x55   :  { %454 = vmatpush.msrb.mxu3 %v2083_v56  ;;  %434 = vmatpush.msrb.mxu2 %v2085_v57 }
  0x56   :  { %395 = vmatpush.msrb.mxu0 %v2087_v58  ;;  %415 = vmatpush.msrb.mxu1 %v2089_v59  ;;  %v2121_v59 = vld [vmem:[#allocation7 + $0x18] sm:$0xff] }
  0x57   :  { %455 = vmatpush.msrb.mxu3 %v2093_v60  ;;  %435 = vmatpush.msrb.mxu2 %v2095_v61  ;;  %2959 = vst [vmem:[#allocation35_spill] sm:$0xff] %v2121_v59 }
  0x58   :  { %396 = vmatpush.msrb.mxu0 %v2098_v62  ;;  %416 = vmatpush.msrb.mxu1 %v2100_v63 }
  0x59   :  { %436 = vmatpush.msrb.mxu2 %v2105_v0  ;;  %456 = vmatpush.msrb.mxu3 %v2107_v1  ;;  %v78_v1 = vld [vmem:[#allocation3 + $0x30] sm:$0xff] }
  0x5a   :  { %185 = vmatmul.f32.gmra.mxu0 %v77_v14  ;;  %226 = vmatmul.f32.gmra.mxu1 %v77_v14 }
  0x5b   :  { %267 = vmatmul.f32.gmra.mxu2 %v77_v14  ;;  %308 = vmatmul.f32.gmra.mxu3 %v77_v14  ;;  %v79_v14 = vld [vmem:[#allocation3 + $0x38] sm:$0xff] }
  0x5c   :  { %397 = vmatpush.msrb.mxu0 %v2113_v27  ;;  %417 = vmatpush.msrb.mxu1 %v2115_v40 }
  0x5d   :  { %437 = vmatpush.msrb.mxu2 %v2119_v53  ;;  %457 = vmatpush.msrb.mxu3 %v2121_v59 }
  0x5e   :  { %529 = vmatpush.msra.mxu0 %v1935_v2  ;;  %549 = vmatpush.msra.mxu1 %v1937_v3 }
  0x5f   :  { %569 = vmatpush.msra.mxu2 %v1941_v5  ;;  %589 = vmatpush.msra.mxu3 %v1939_v4 }
  0x60   :  { %530 = vmatpush.msra.mxu0 %v1943_v6  ;;  %550 = vmatpush.msra.mxu1 %v1945_v7 }
  0x61   :  { %570 = vmatpush.msra.mxu2 %v1951_v9  ;;  %590 = vmatpush.msra.mxu3 %v1949_v8 }
  0x62   :  { %188 = vmatmul.f32.gmra.mxu0 %v78_v1  ;;  %229 = vmatmul.f32.gmra.mxu1 %v78_v1 }
  0x63   :  { %270 = vmatmul.f32.gmra.mxu2 %v78_v1  ;;  %311 = vmatmul.f32.gmra.mxu3 %v78_v1  ;;  %v1887_v1 = vmov 0.0  }
  0x64   :  { %531 = vmatpush.msra.mxu0 %v1954_v10  ;;  %551 = vmatpush.msra.mxu1 %v1956_v11 }
  0x65   :  { %571 = vmatpush.msra.mxu2 %v1963_v13  ;;  %591 = vmatpush.msra.mxu3 %v1961_v12 }
  0x66   :  { %532 = vmatpush.msra.mxu0 %v1969_v15  ;;  %552 = vmatpush.msra.mxu1 %v1971_v16 }
  0x67   :  { %572 = vmatpush.msra.mxu2 %v1977_v18  ;;  %592 = vmatpush.msra.mxu3 %v1975_v17 }
  0x68   :  { %533 = vmatpush.msra.mxu0 %v1979_v19  ;;  %553 = vmatpush.msra.mxu1 %v1981_v20 }
  0x69   :  { %573 = vmatpush.msra.mxu2 %v1987_v22  ;;  %593 = vmatpush.msra.mxu3 %v1985_v21 }
  0x6a   :  { %191 = vmatmul.f32.gmra.mxu0 %v79_v14  ;;  %232 = vmatmul.f32.gmra.mxu1 %v79_v14 }
  0x6b   :  { %273 = vmatmul.f32.gmra.mxu2 %v79_v14  ;;  %314 = vmatmul.f32.gmra.mxu3 %v79_v14  ;;  %v2960_v14 = vld [vmem:[#allocation25_spill] sm:$0xff] }
  0x6c   :  { %534 = vmatpush.msra.mxu0 %v1990_v23  ;;  %554 = vmatpush.msra.mxu1 %v1992_v24 }
  0x6d   :  { %574 = vmatpush.msra.mxu2 %v1999_v26  ;;  %594 = vmatpush.msra.mxu3 %v1997_v25 }
  0x6e   :  { %535 = vmatpush.msra.mxu0 %v2005_v28  ;;  %555 = vmatpush.msra.mxu1 %v2007_v29 }
  0x6f   :  { %575 = vmatpush.msra.mxu2 %v2013_v31  ;;  %595 = vmatpush.msra.mxu3 %v2011_v30 }
  0x70   :  { %536 = vmatpush.msra.mxu0 %v2015_v32  ;;  %556 = vmatpush.msra.mxu1 %v2017_v33 }
  0x71   :  { %576 = vmatpush.msra.mxu2 %v2023_v35  ;;  %596 = vmatpush.msra.mxu3 %v2021_v34 }
  0x72   :  { %398 = vmatmul.f32.vlgmr.msrb.gmra.mxu0 %v1887_v1  ;;  %418 = vmatmul.f32.vlgmr.msrb.gmra.mxu1 %v1887_v1 }
  0x73   :  { %438 = vmatmul.f32.vlgmr.msrb.gmra.mxu2 %v1887_v1  ;;  %458 = vmatmul.f32.vlgmr.msrb.gmra.mxu3 %v1887_v1  ;;  %v2961_v1 = vld [vmem:[#allocation31_spill] sm:$0xff] }
  0x74   :  { %537 = vmatpush.msra.mxu0 %v2026_v36  ;;  %557 = vmatpush.msra.mxu1 %v2028_v37 }
  0x75   :  { %577 = vmatpush.msra.mxu2 %v2035_v39  ;;  %597 = vmatpush.msra.mxu3 %v2033_v38 }
  0x76   :  { %538 = vmatpush.msra.mxu0 %v2041_v41  ;;  %558 = vmatpush.msra.mxu1 %v2043_v42 }
  0x77   :  { %578 = vmatpush.msra.mxu2 %v2049_v44  ;;  %598 = vmatpush.msra.mxu3 %v2047_v43 }
  0x78   :  { %539 = vmatpush.msra.mxu0 %v2051_v45  ;;  %559 = vmatpush.msra.mxu1 %v2053_v46 }
  0x79   :  { %579 = vmatpush.msra.mxu2 %v2059_v48  ;;  %599 = vmatpush.msra.mxu3 %v2057_v47 }
  0x7a   :  { %540 = vmatpush.msra.mxu0 %v2062_v49  ;;  %560 = vmatpush.msra.mxu1 %v2064_v50 }
  0x7b   :  { %580 = vmatpush.msra.mxu2 %v2071_v52  ;;  %600 = vmatpush.msra.mxu3 %v2069_v51 }
  0x7c   :  { %541 = vmatpush.msra.mxu0 %v2077_v54  ;;  %561 = vmatpush.msra.mxu1 %v2079_v55 }
  0x7d   :  { %581 = vmatpush.msra.mxu2 %v2085_v57  ;;  %601 = vmatpush.msra.mxu3 %v2083_v56 }
  0x7e   :  { %542 = vmatpush.msra.mxu0 %v2087_v58  ;;  %562 = vmatpush.msra.mxu1 %v2960_v14 }
  0x7f   :  { %582 = vmatpush.msra.mxu2 %v2095_v61  ;;  %602 = vmatpush.msra.mxu3 %v2093_v60 }
  0x80   :  { %543 = vmatpush.msra.mxu0 %v2098_v62  ;;  %563 = vmatpush.msra.mxu1 %v2100_v63 }
  0x81   :  { %583 = vmatpush.msra.mxu2 %v2105_v0  ;;  %603 = vmatpush.msra.mxu3 %v2961_v1 }
  0x82   :  { %544 = vmatpush.msra.mxu0 %v2113_v27  ;;  %564 = vmatpush.msra.mxu1 %v2115_v40 }
  0x83   :  { %584 = vmatpush.msra.mxu2 %v2119_v53  ;;  %604 = vmatpush.msra.mxu3 %v2121_v59 }
  0x84   :  { %676 = vmatpush.msrb.mxu0 %v1935_v2  ;;  %696 = vmatpush.msrb.mxu1 %v1937_v3 }
  0x85   :  { %716 = vmatpush.msrb.mxu2 %v1941_v5  ;;  %736 = vmatpush.msrb.mxu3 %v1939_v4 }
  0x86   :  { %677 = vmatpush.msrb.mxu0 %v1943_v6  ;;  %697 = vmatpush.msrb.mxu1 %v1945_v7 }
  0x87   :  { %717 = vmatpush.msrb.mxu2 %v1951_v9  ;;  %737 = vmatpush.msrb.mxu3 %v1949_v8 }
  0x88   :  { %678 = vmatpush.msrb.mxu0 %v1954_v10  ;;  %698 = vmatpush.msrb.mxu1 %v1956_v11 }
  0x89   :  { %718 = vmatpush.msrb.mxu2 %v1963_v13  ;;  %738 = vmatpush.msrb.mxu3 %v1961_v12 }
  0x8a   :  { %679 = vmatpush.msrb.mxu0 %v1969_v15  ;;  %699 = vmatpush.msrb.mxu1 %v1971_v16 }
  0x8b   :  { %719 = vmatpush.msrb.mxu2 %v1977_v18  ;;  %739 = vmatpush.msrb.mxu3 %v1975_v17 }
  0x8c   :  { %680 = vmatpush.msrb.mxu0 %v1979_v19  ;;  %700 = vmatpush.msrb.mxu1 %v1981_v20 }
  0x8d   :  { %720 = vmatpush.msrb.mxu2 %v1987_v22  ;;  %740 = vmatpush.msrb.mxu3 %v1985_v21 }
  0x8e   :  { %681 = vmatpush.msrb.mxu0 %v1990_v23  ;;  %701 = vmatpush.msrb.mxu1 %v1992_v24 }
  0x8f   :  { %721 = vmatpush.msrb.mxu2 %v1999_v26  ;;  %741 = vmatpush.msrb.mxu3 %v1997_v25 }
  0x90   :  { %682 = vmatpush.msrb.mxu0 %v2005_v28  ;;  %702 = vmatpush.msrb.mxu1 %v2007_v29 }
  0x91   :  { %722 = vmatpush.msrb.mxu2 %v2013_v31  ;;  %742 = vmatpush.msrb.mxu3 %v2011_v30 }
  0x92   :  { %683 = vmatpush.msrb.mxu0 %v2015_v32  ;;  %703 = vmatpush.msrb.mxu1 %v2017_v33 }
  0x93   :  { %723 = vmatpush.msrb.mxu2 %v2023_v35  ;;  %743 = vmatpush.msrb.mxu3 %v2021_v34 }
  0x94   :  { %684 = vmatpush.msrb.mxu0 %v2026_v36  ;;  %704 = vmatpush.msrb.mxu1 %v2028_v37 }
  0x95   :  { %724 = vmatpush.msrb.mxu2 %v2035_v39  ;;  %744 = vmatpush.msrb.mxu3 %v2033_v38 }
  0x96   :  { %685 = vmatpush.msrb.mxu0 %v2041_v41  ;;  %705 = vmatpush.msrb.mxu1 %v2043_v42 }
  0x97   :  { %725 = vmatpush.msrb.mxu2 %v2049_v44  ;;  %745 = vmatpush.msrb.mxu3 %v2047_v43 }
  0x98   :  { %686 = vmatpush.msrb.mxu0 %v2051_v45  ;;  %706 = vmatpush.msrb.mxu1 %v2053_v46 }
  0x99   :  { %726 = vmatpush.msrb.mxu2 %v2059_v48  ;;  %746 = vmatpush.msrb.mxu3 %v2057_v47 }
  0x9a   :  { %687 = vmatpush.msrb.mxu0 %v2062_v49  ;;  %707 = vmatpush.msrb.mxu1 %v2064_v50 }
  0x9b   :  { %727 = vmatpush.msrb.mxu2 %v2071_v52  ;;  %747 = vmatpush.msrb.mxu3 %v2069_v51 }
  0x9c   :  { %688 = vmatpush.msrb.mxu0 %v2077_v54  ;;  %708 = vmatpush.msrb.mxu1 %v2079_v55 }
  0x9d   :  { %728 = vmatpush.msrb.mxu2 %v2085_v57  ;;  %748 = vmatpush.msrb.mxu3 %v2083_v56 }
  0x9e   :  { %689 = vmatpush.msrb.mxu0 %v2087_v58  ;;  %709 = vmatpush.msrb.mxu1 %v2960_v14 }
  0x9f   :  { %729 = vmatpush.msrb.mxu2 %v2095_v61  ;;  %749 = vmatpush.msrb.mxu3 %v2093_v60 }
  0xa0   :  { %690 = vmatpush.msrb.mxu0 %v2098_v62  ;;  %710 = vmatpush.msrb.mxu1 %v2100_v63  ;;  %v144_v62 = vld [vmem:[%s2843_s3] sm:$0xf] }
  0xa1   :  { %730 = vmatpush.msrb.mxu2 %v2105_v0  ;;  %750 = vmatpush.msrb.mxu3 %v2961_v1  ;;  %v146_v60 = vperm.slane %v144_v62, 0  ;;  %v147_v63 = vperm.slane %v144_v62, 1 }
  0xa2   :  { %691 = vmatpush.msrb.mxu0 %v2113_v27  ;;  %711 = vmatpush.msrb.mxu1 %v2115_v40 }
  0xa3   :  { %731 = vmatpush.msrb.mxu2 %v2119_v53  ;;  %751 = vmatpush.msrb.mxu3 %v2121_v59  ;;  %v2266_v53 = vperm.slane %v144_v62, 2  ;;  %v149_v59 = vperm.slane %v144_v62, 3 }
  0xaf   :  { %v171_v14 = vpop.f32.mrf.mxu0  ;;  %v212_v61 = vpop.f32.mrf.mxu1 }
  0xb6   :  { %v2258_v58 = vpop.f32.mrf.mxu2  ;;  %v2260_v0 = vpop.f32.mrf.mxu3 }
  0xb7   :  { %v174_v1 = vpop.f32.mrf.mxu0  ;;  %v215_v27 = vpop.f32.mrf.mxu1 }
  0xb8   :  { %v2262_v56 = vadd.f32 %v174_v1, %v146_v60  ;;  %v2264_v40 = vadd.f32 %v215_v27, %v147_v63 }
  0xba   :  { %2962 = vst [vmem:[#allocation36_spill] sm:$0xff] %v2262_v56 }
  0xbb   :  { %2963 = vst [vmem:[#allocation37_spill] sm:$0xff] %v2264_v40 }
  0xbe   :  { %v256_v57 = vpop.f32.mrf.mxu2  ;;  %v297_v55 = vpop.f32.mrf.mxu3 }
  0xbf   :  { %v2269_v54 = vadd.f32 %v256_v57, %v2266_v53  ;;  %v2271_v51 = vadd.f32 %v297_v55, %v149_v59  ;;  %v177_v52 = vpop.f32.mrf.mxu0  ;;  %v218_v50 = vpop.f32.mrf.mxu1 }
  0xc0   :  { %v2273_v49 = vadd.f32 %v177_v52, %v146_v60  ;;  %v2275_v47 = vadd.f32 %v218_v50, %v147_v63 }
  0xc1   :  { %2964 = vst [vmem:[#allocation38_spill] sm:$0xff] %v2269_v54 }
  0xc2   :  { %2965 = vst [vmem:[#allocation39_spill] sm:$0xff] %v2271_v51 }
  0xc3   :  { %2966 = vst [vmem:[#allocation40_spill] sm:$0xff] %v2273_v49 }
  0xc4   :  { %2967 = vst [vmem:[#allocation41_spill] sm:$0xff] %v2275_v47 }
  0xc6   :  { %v259_v1 = vpop.f32.mrf.mxu2  ;;  %v300_v56 = vpop.f32.mrf.mxu3 }
  0xc7   :  { %v2278_v27 = vadd.f32 %v259_v1, %v2266_v53  ;;  %v2280_v40 = vadd.f32 %v300_v56, %v149_v59  ;;  %v180_v62 = vpop.f32.mrf.mxu0  ;;  %v221_v48 = vpop.f32.mrf.mxu1 }
  0xc8   :  { %v2282_v46 = vadd.f32 %v180_v62, %v146_v60  ;;  %v2284_v57 = vadd.f32 %v221_v48, %v147_v63 }
  0xc9   :  { %2968 = vst [vmem:[#allocation42_spill] sm:$0xff] %v2278_v27 }
  0xca   :  { %2969 = vst [vmem:[#allocation43_spill] sm:$0xff] %v2280_v40 }
  0xcb   :  { %2970 = vst [vmem:[#allocation44_spill] sm:$0xff] %v2282_v46 }
  0xcc   :  { %2971 = vst [vmem:[#allocation45_spill] sm:$0xff] %v2284_v57 }
  0xce   :  { %v262_v55 = vpop.f32.mrf.mxu2  ;;  %v303_v54 = vpop.f32.mrf.mxu3 }
  0xcf   :  { %v2287_v52 = vadd.f32 %v262_v55, %v2266_v53  ;;  %v2289_v50 = vadd.f32 %v303_v54, %v149_v59  ;;  %v183_v47 = vpop.f32.mrf.mxu0  ;;  %v224_v49 = vpop.f32.mrf.mxu1 }
  0xd0   :  { %v2291_v51 = vadd.f32 %v183_v47, %v146_v60  ;;  %v2293_v1 = vadd.f32 %v224_v49, %v147_v63 }
  0xd1   :  { %2972 = vst [vmem:[#allocation46_spill] sm:$0xff] %v2287_v52 }
  0xd2   :  { %2973 = vst [vmem:[#allocation47_spill] sm:$0xff] %v2289_v50 }
  0xd3   :  { %2974 = vst [vmem:[#allocation48_spill] sm:$0xff] %v2291_v51 }
  0xd4   :  { %2975 = vst [vmem:[#allocation49_spill] sm:$0xff] %v2293_v1 }
  0xd6   :  { %v265_v56 = vpop.f32.mrf.mxu2  ;;  %v306_v27 = vpop.f32.mrf.mxu3 }
  0xd7   :  { %v2296_v62 = vadd.f32 %v265_v56, %v2266_v53  ;;  %v2298_v48 = vadd.f32 %v306_v27, %v149_v59  ;;  %v186_v57 = vpop.f32.mrf.mxu0  ;;  %v227_v46 = vpop.f32.mrf.mxu1 }
  0xd8   :  { %v2300_v40 = vadd.f32 %v186_v57, %v146_v60  ;;  %v2302_v55 = vadd.f32 %v227_v46, %v147_v63 }
  0xd9   :  { %2976 = vst [vmem:[#allocation50_spill] sm:$0xff] %v2296_v62 }
  0xda   :  { %2977 = vst [vmem:[#allocation51_spill] sm:$0xff] %v2298_v48 }
  0xdb   :  { %2978 = vst [vmem:[#allocation52_spill] sm:$0xff] %v2300_v40 }
  0xdc   :  { %2979 = vst [vmem:[#allocation53_spill] sm:$0xff] %v2302_v55 }
  0xde   :  { %v268_v54 = vpop.f32.mrf.mxu2  ;;  %v309_v52 = vpop.f32.mrf.mxu3 }
  0xdf   :  { %v2305_v47 = vadd.f32 %v268_v54, %v2266_v53  ;;  %v2307_v49 = vadd.f32 %v309_v52, %v149_v59  ;;  %v189_v1 = vpop.f32.mrf.mxu0  ;;  %v230_v51 = vpop.f32.mrf.mxu1  ;;  %v172_v52 = vadd.f32 %v171_v14, %v146_v60 }
  0xe0   :  { %v2309_v50 = vadd.f32 %v189_v1, %v146_v60  ;;  %v2311_v56 = vadd.f32 %v230_v51, %v147_v63 }
  0xe1   :  { %2980 = vst [vmem:[#allocation54_spill] sm:$0xff] %v2305_v47  ;;  %v213_v47 = vadd.f32 %v212_v61, %v147_v63 }
  0xe2   :  { %2981 = vst [vmem:[#allocation55_spill] sm:$0xff] %v2307_v49 }
  0xe3   :  { %2982 = vst [vmem:[#allocation56_spill] sm:$0xff] %v2309_v50 }
  0xe4   :  { %2983 = vst [vmem:[#allocation57_spill] sm:$0xff] %v2311_v56 }
  0xe6   :  { %v271_v27 = vpop.f32.mrf.mxu2  ;;  %v312_v62 = vpop.f32.mrf.mxu3 }
  0xe7   :  { %v2314_v57 = vadd.f32 %v271_v27, %v2266_v53  ;;  %v2316_v46 = vadd.f32 %v312_v62, %v149_v59  ;;  %v192_v55 = vpop.f32.mrf.mxu0  ;;  %v233_v40 = vpop.f32.mrf.mxu1 }
  0xe8   :  { %v2318_v48 = vadd.f32 %v192_v55, %v146_v60  ;;  %v2320_v54 = vadd.f32 %v233_v40, %v147_v63  ;;  %v295_v55 = vadd.f32 %v2260_v0, %v149_v59 }
  0xe9   :  { %2984 = vst [vmem:[#allocation58_spill] sm:$0xff] %v2314_v57 }
  0xea   :  { %2985 = vst [vmem:[#allocation59_spill] sm:$0xff] %v2316_v46 }
  0xeb   :  { %2986 = vst [vmem:[#allocation60_spill] sm:$0xff] %v2318_v48 }
  0xec   :  { %2987 = vst [vmem:[#allocation61_spill] sm:$0xff] %v2320_v54 }
  0xee   :  { %v274_v49 = vpop.f32.mrf.mxu2  ;;  %v315_v1 = vpop.f32.mrf.mxu3 }
  0xef   :  { %v2323_v51 = vadd.f32 %v274_v49, %v2266_v53  ;;  %v2325_v56 = vadd.f32 %v315_v1, %v149_v59  ;;  %v399_v50 = vpop.f32.mrf.mxu0  ;;  %v419_v27 = vpop.f32.mrf.mxu1 }
  0xf0   :  { %v462_v57 = vadd.f32 %v399_v50, %v172_v52  ;;  %v463_v62 = vadd.f32 %v419_v27, %v213_v47  ;;  %v254_v50 = vadd.f32 %v2258_v58, %v2266_v53 }
  0xf1   :  { %2988 = vst [vmem:[#allocation62_spill] sm:$0xff] %v2323_v51 }
  0xf2   :  { %2989 = vst [vmem:[#allocation63_spill] sm:$0xff] %v2325_v56  ;;  %v1578_v46 = vmul.f32 -1.442695, %v462_v57  ;;  %v1579_v45 = vmul.f32 -1.442695, %v463_v62 }
  0xf4   :  { %1612 = vpow2.f32 %v1578_v46 }
  0xf5   :  { %1614 = vpow2.f32 %v1579_v45 }
  0xf6   :  { %v459_v40 = vpop.f32.mrf.mxu3  ;;  %v439_v1 = vpop.f32.mrf.mxu2 }
  0xf7   :  { %v465_v60 = vadd.f32 %v459_v40, %v295_v55  ;;  %v464_v46 = vadd.f32 %v439_v1, %v254_v50 }
  0xf9   :  { %v1580_v61 = vmul.f32 -1.442695, %v465_v60 }
  0xfa   :  { %v1613_v63 = vpop.eup %1612 }
  0xfb   :  { %v1615_v14 = vpop.eup %1614  ;;  %v469_v54 = vadd.f32 1.0, %v1613_v63  ;;  %1616 = vpow2.f32 %v1580_v61 }
  0xfc   :  { %v488_v49 = vadd.f32 1.0, %v1615_v14 }
  0xfd   :  { %1618 = vrcp.f32 %v469_v54  ;;  %v481_v62 = vand.u32 2147483648, %v469_v54  ;;  %v479_v60 = vand.u32 2147483647, %v469_v54  ;;  %vm475_vm2 = vweird.f32 %v469_v54 }
  0xfe   :  { %1620 = vrcp.f32 %v488_v49  ;;  %v500_v55 = vand.u32 2147483648, %v488_v49  ;;  %v498_v63 = vand.u32 2147483647, %v488_v49  ;;  %vm494_vm3 = vweird.f32 %v488_v49 }
  0xff   :  { %v482_v53 = vor.u32 1.1754944e-38, %v481_v62  ;;  %vm480_vm5 = vcmp.eq.f32.partialorder %v479_v60, 8.507059e+37 }
 0x100   :  { %v501_v50 = vor.u32 1.1754944e-38, %v500_v55  ;;  %vm499_vm7 = vcmp.eq.f32.partialorder %v498_v63, 8.507059e+37 }
 0x101   :  { %v1617_v51 = vpop.eup %1616 }
 0x102   :  { %v508_v47 = vadd.f32 1.0, %v1617_v51 }
 0x103   :  { %v1619_v57 = vpop.eup %1618 }
 0x104   :  { %v1621_v59 = vpop.eup %1620  ;;  %v471_v45 = vmul.f32 %v1619_v57, %v469_v54  ;;  %1622 = vrcp.f32 %v508_v47  ;;  %vm476_vm0 = vweird.f32 %v1619_v57  ;;  %vm514_vm9 = vweird.f32 %v508_v47 }
 0x105   :  { %v490_v0 = vmul.f32 %v1621_v59, %v488_v49  ;;  %1624 = vtanh.f32 %v464_v46  ;;  %vm495_vm1 = vweird.f32 %v1621_v59  ;;  %vm477_vm4 = vmor %vm475_vm2, %vm476_vm0  ;;  %v520_v49 = vand.u32 2147483648, %v508_v47 }
 0x106   :  { %v472_v52 = vsub.f32 1.0, %v471_v45  ;;  %vm496_vm6 = vmor %vm494_vm3, %vm495_vm1 }
 0x107   :  { %v491_v27 = vsub.f32 1.0, %v490_v0  ;;  %v521_v55 = vor.u32 1.1754944e-38, %v520_v49 }
 0x108   :  { %v473_v40 = vmul.f32 %v1619_v57, %v472_v52 }
 0x109   :  { %v492_v61 = vmul.f32 %v1621_v59, %v491_v27 }
 0x10a   :  { %v1623_v14 = vpop.eup %1622  ;;  %v474_v58 = vadd.f32 %v1619_v57, %v473_v40 }
 0x10b   :  { %v493_v51 = vadd.f32 %v1621_v59, %v492_v61  ;;  %v510_v1 = vmul.f32 %v1623_v14, %v508_v47  ;;  %v1625_v46 = vpop.eup %1624  ;;  %vm515_vm8 = vweird.f32 %v1623_v14 }
 0x10c   :  { %v478_v45 = vsel %vm477_vm4, %v1619_v57, %v474_v58  ;;  %v518_v57 = vand.u32 2147483647, %v508_v47  ;;  %vm516_vm10 = vmor %vm514_vm9, %vm515_vm8 }
 0x10d   :  { %v483_v0 = vsel %vm480_vm5, %v482_v53, %v478_v45  ;;  %v497_v52 = vsel %vm496_vm6, %v1621_v59, %v493_v51  ;;  %v511_v56 = vsub.f32 1.0, %v510_v1  ;;  %v3019_v53 = vld [vmem:[#allocation38_spill] sm:$0xff] }
 0x10e   :  { %v502_v27 = vsel %vm499_vm7, %v501_v50, %v497_v52  ;;  %v525_v48 = vmul.f32 %v1625_v46, %v483_v0  ;;  %vm519_vm11 = vcmp.eq.f32.partialorder %v518_v57, 8.507059e+37 }
 0x10f   :  { %v524_v43 = vmul.f32 0.0, %v502_v27  ;;  %v512_v44 = vmul.f32 %v1623_v14, %v511_v56 }
 0x111   :  { %v2330_v40 = vadd.f32 %v525_v48, %v524_v43  ;;  %v513_v54 = vadd.f32 %v1623_v14, %v512_v44 }
 0x113   :  { %1626 = vtanh.f32 %v2330_v40  ;;  %v517_v62 = vsel %vm516_vm10, %v1623_v14, %v513_v54 }
 0x114   :  { %v522_v60 = vsel %vm519_vm11, %v521_v55, %v517_v62 }
 0x119   :  { %v1627_v59 = vpop.eup %1626 }
 0x11a   :  { %v528_v61 = vmul.f32 %v1627_v59, %v522_v60 }
 0x11c   :  { %545 = vmatmul.f32.vlgmr.msra.gmra.mxu0 %v528_v61  ;;  %565 = vmatmul.f32.vlgmr.msra.gmra.mxu1 %v528_v61 }
 0x11d   :  { %585 = vmatmul.f32.vlgmr.msra.gmra.mxu2 %v528_v61  ;;  %605 = vmatmul.f32.vlgmr.msra.gmra.mxu3 %v528_v61 }
 0x11e   :  { %823 = vmatpush.msra.mxu0 %v1935_v2  ;;  %843 = vmatpush.msra.mxu1 %v1937_v3  ;;  %v2990_v2 = vld [vmem:[#allocation11_spill] sm:$0xff]  ;;  %v2991_v3 = vld [vmem:[#allocation10_spill] sm:$0xff] }
 0x11f   :  { %863 = vmatpush.msra.mxu2 %v1941_v5  ;;  %883 = vmatpush.msra.mxu3 %v1939_v4  ;;  %v2992_v4 = vld [vmem:[#allocation12_spill] sm:$0xff]  ;;  %v2993_v5 = vld [vmem:[#allocation13_spill] sm:$0xff] }
 0x120   :  { %824 = vmatpush.msra.mxu0 %v1943_v6  ;;  %844 = vmatpush.msra.mxu1 %v1945_v7  ;;  %v2994_v6 = vld [vmem:[#allocation15_spill] sm:$0xff]  ;;  %v2995_v7 = vld [vmem:[#allocation14_spill] sm:$0xff] }
 0x121   :  { %864 = vmatpush.msra.mxu2 %v1951_v9  ;;  %884 = vmatpush.msra.mxu3 %v1949_v8  ;;  %v2996_v8 = vld [vmem:[#allocation16_spill] sm:$0xff]  ;;  %v2997_v9 = vld [vmem:[#allocation17_spill] sm:$0xff] }
 0x122   :  { %825 = vmatpush.msra.mxu0 %v1954_v10  ;;  %845 = vmatpush.msra.mxu1 %v1956_v11  ;;  %v2998_v10 = vld [vmem:[#allocation19_spill] sm:$0xff]  ;;  %v2999_v11 = vld [vmem:[#allocation18_spill] sm:$0xff] }
 0x123   :  { %865 = vmatpush.msra.mxu2 %v1963_v13  ;;  %885 = vmatpush.msra.mxu3 %v1961_v12  ;;  %v3000_v12 = vld [vmem:[#allocation20_spill] sm:$0xff]  ;;  %v3001_v13 = vld [vmem:[#allocation21_spill] sm:$0xff] }
 0x124   :  { %826 = vmatpush.msra.mxu0 %v1969_v15  ;;  %846 = vmatpush.msra.mxu1 %v1971_v16  ;;  %v3002_v15 = vld [vmem:[#allocation23_spill] sm:$0xff]  ;;  %v3003_v16 = vld [vmem:[#allocation22_spill] sm:$0xff] }
 0x125   :  { %866 = vmatpush.msra.mxu2 %v1977_v18  ;;  %886 = vmatpush.msra.mxu3 %v1975_v17  ;;  %v3004_v17 = vld [vmem:[#allocation24_spill] sm:$0xff]  ;;  %v3005_v18 = vld [vmem:[#allocation25_spill] sm:$0xff] }
 0x126   :  { %827 = vmatpush.msra.mxu0 %v1979_v19  ;;  %847 = vmatpush.msra.mxu1 %v1981_v20  ;;  %v3006_v19 = vld [vmem:[#allocation27_spill] sm:$0xff]  ;;  %v3007_v20 = vld [vmem:[#allocation26_spill] sm:$0xff] }
 0x127   :  { %867 = vmatpush.msra.mxu2 %v1987_v22  ;;  %887 = vmatpush.msra.mxu3 %v1985_v21  ;;  %v3008_v21 = vld [vmem:[#allocation28_spill] sm:$0xff]  ;;  %v3009_v22 = vld [vmem:[#allocation29_spill] sm:$0xff] }
 0x128   :  { %828 = vmatpush.msra.mxu0 %v1990_v23  ;;  %848 = vmatpush.msra.mxu1 %v1992_v24  ;;  %v3010_v23 = vld [vmem:[#allocation30_spill] sm:$0xff]  ;;  %v3011_v24 = vld [vmem:[#allocation31_spill] sm:$0xff] }
 0x129   :  { %868 = vmatpush.msra.mxu2 %v1999_v26  ;;  %888 = vmatpush.msra.mxu3 %v1997_v25  ;;  %v3012_v25 = vld [vmem:[#allocation32_spill] sm:$0xff]  ;;  %v3013_v26 = vld [vmem:[#allocation33_spill] sm:$0xff] }
 0x12a   :  { %829 = vmatpush.msra.mxu0 %v2005_v28  ;;  %849 = vmatpush.msra.mxu1 %v2007_v29  ;;  %v3014_v28 = vld [vmem:[#allocation34_spill] sm:$0xff]  ;;  %v3015_v29 = vld [vmem:[#allocation35_spill] sm:$0xff] }
 0x12b   :  { %869 = vmatpush.msra.mxu2 %v2013_v31  ;;  %889 = vmatpush.msra.mxu3 %v2011_v30 }
 0x12c   :  { %830 = vmatpush.msra.mxu0 %v2015_v32  ;;  %850 = vmatpush.msra.mxu1 %v2017_v33  ;;  %v3016_v32 = vld [vmem:[#allocation36_spill] sm:$0xff] }
 0x12d   :  { %870 = vmatpush.msra.mxu2 %v2023_v35  ;;  %890 = vmatpush.msra.mxu3 %v2021_v34  ;;  %v3017_v34 = vld [vmem:[#allocation37_spill] sm:$0xff] }
 0x12e   :  { %831 = vmatpush.msra.mxu0 %v2026_v36  ;;  %851 = vmatpush.msra.mxu1 %v2028_v37 }
 0x12f   :  { %871 = vmatpush.msra.mxu2 %v2035_v39  ;;  %891 = vmatpush.msra.mxu3 %v2033_v38  ;;  %v3018_v39 = vld [vmem:[#allocation39_spill] sm:$0xff] }
 0x130   :  { %832 = vmatpush.msra.mxu0 %v2041_v41  ;;  %852 = vmatpush.msra.mxu1 %v2043_v42 }
 0x131   :  { %872 = vmatpush.msra.mxu2 %v2990_v2  ;;  %892 = vmatpush.msra.mxu3 %v2991_v3 }
 0x132   :  { %833 = vmatpush.msra.mxu0 %v2992_v4  ;;  %853 = vmatpush.msra.mxu1 %v2993_v5 }
 0x133   :  { %873 = vmatpush.msra.mxu2 %v2994_v6  ;;  %893 = vmatpush.msra.mxu3 %v2995_v7 }
 0x134   :  { %834 = vmatpush.msra.mxu0 %v2996_v8  ;;  %854 = vmatpush.msra.mxu1 %v2997_v9 }
 0x135   :  { %874 = vmatpush.msra.mxu2 %v2998_v10  ;;  %894 = vmatpush.msra.mxu3 %v2999_v11 }
 0x136   :  { %835 = vmatpush.msra.mxu0 %v3000_v12  ;;  %855 = vmatpush.msra.mxu1 %v3001_v13 }
 0x137   :  { %875 = vmatpush.msra.mxu2 %v3002_v15  ;;  %895 = vmatpush.msra.mxu3 %v3003_v16 }
 0x138   :  { %836 = vmatpush.msra.mxu0 %v3004_v17  ;;  %856 = vmatpush.msra.mxu1 %v3005_v18 }
 0x139   :  { %876 = vmatpush.msra.mxu2 %v3006_v19  ;;  %896 = vmatpush.msra.mxu3 %v3007_v20 }
 0x13a   :  { %837 = vmatpush.msra.mxu0 %v3008_v21  ;;  %857 = vmatpush.msra.mxu1 %v3009_v22 }
 0x13b   :  { %877 = vmatpush.msra.mxu2 %v3010_v23  ;;  %897 = vmatpush.msra.mxu3 %v3011_v24 }
 0x13c   :  { %838 = vmatpush.msra.mxu0 %v3012_v25  ;;  %858 = vmatpush.msra.mxu1 %v3013_v26 }
 0x13d   :  { %878 = vmatpush.msra.mxu2 %v3014_v28  ;;  %898 = vmatpush.msra.mxu3 %v3015_v29 }
 0x199   :  { %v546_v30 = vpop.f32.mrf.mxu0  ;;  %v566_v31 = vpop.f32.mrf.mxu1 }
 0x19a   :  { %v609_v33 = vadd.f32 %v546_v30, %v3016_v32  ;;  %v610_v35 = vadd.f32 %v566_v31, %v3017_v34  ;;  %v2408_v30 = vld [vmem:[#allocation7 + $0x1e8] sm:$0xff]  ;;  %v2411_v31 = vld [vmem:[#allocation7 + $0x1f0] sm:$0xff]  ;;  %v2414_v32 = vld [vmem:[#allocation7 + $0x1f8] sm:$0xff] }
 0x19b   :  { %v2420_v34 = vld [vmem:[#allocation7 + $0x1c8] sm:$0xff] }
 0x19c   :  { %v1581_v36 = vmul.f32 -1.442695, %v609_v33  ;;  %v1582_v37 = vmul.f32 -1.442695, %v610_v35  ;;  %v2417_v33 = vld [vmem:[#allocation7 + $0x1c0] sm:$0xff]  ;;  %v2423_v35 = vld [vmem:[#allocation7 + $0x1d0] sm:$0xff] }
 0x19e   :  { %1628 = vpow2.f32 %v1581_v36  ;;  %v2426_v36 = vld [vmem:[#allocation7 + $0x1d8] sm:$0xff] }
 0x19f   :  { %1630 = vpow2.f32 %v1582_v37  ;;  %v2429_v37 = vld [vmem:[#allocation7 + $0x1a0] sm:$0xff] }
 0x1a0   :  { %v606_v38 = vpop.f32.mrf.mxu3  ;;  %v586_v47 = vpop.f32.mrf.mxu2 }
 0x1a1   :  { %v612_v41 = vadd.f32 %v606_v38, %v3018_v39  ;;  %v611_v51 = vadd.f32 %v586_v47, %v3019_v53  ;;  %v2432_v38 = vld [vmem:[#allocation7 + $0x1a8] sm:$0xff]  ;;  %v2435_v39 = vld [vmem:[#allocation7 + $0x1b0] sm:$0xff] }
 0x1a2   :  { %v2456_v47 = vld [vmem:[#allocation7 + $0x168] sm:$0xff] }
 0x1a3   :  { %v1583_v42 = vmul.f32 -1.442695, %v612_v41  ;;  %v2438_v41 = vld [vmem:[#allocation7 + $0x1b8] sm:$0xff]  ;;  %v2468_v53 = vld [vmem:[#allocation7 + $0x148] sm:$0xff] }
 0x1a4   :  { %v1629_v43 = vpop.eup %1628 }
 0x1a5   :  { %v1631_v44 = vpop.eup %1630  ;;  %v616_v48 = vadd.f32 1.0, %v1629_v43  ;;  %1632 = vpow2.f32 %v1583_v42  ;;  %v2441_v42 = vld [vmem:[#allocation7 + $0x180] sm:$0xff]  ;;  %v2444_v43 = vld [vmem:[#allocation7 + $0x188] sm:$0xff] }
 0x1a6   :  { %v635_v56 = vadd.f32 1.0, %v1631_v44  ;;  %v2447_v44 = vld [vmem:[#allocation7 + $0x190] sm:$0xff] }
 0x1a7   :  { %1634 = vrcp.f32 %v616_v48  ;;  %v628_v52 = vand.u32 2147483648, %v616_v48  ;;  %v626_v49 = vand.u32 2147483647, %v616_v48  ;;  %vm622_vm14 = vweird.f32 %v616_v48 }
 0x1a8   :  { %1636 = vrcp.f32 %v635_v56  ;;  %v647_v27 = vand.u32 2147483648, %v635_v56  ;;  %v645_v62 = vand.u32 2147483647, %v635_v56  ;;  %vm641_vm15 = vweird.f32 %v635_v56 }
 0x1a9   :  { %v629_v60 = vor.u32 1.1754944e-38, %v628_v52  ;;  %vm627_vm2 = vcmp.eq.f32.partialorder %v626_v49, 8.507059e+37  ;;  %v2489_v52 = vld [vmem:[#allocation7 + $0x100] sm:$0xff]  ;;  %v2498_v49 = vld [vmem:[#allocation7 + $0x118] sm:$0xff] }
 0x1aa   :  { %v648_v3 = vor.u32 1.1754944e-38, %v647_v27  ;;  %vm646_vm3 = vcmp.eq.f32.partialorder %v645_v62, 8.507059e+37  ;;  %v2492_v27 = vld [vmem:[#allocation7 + $0x108] sm:$0xff] }
 0x1ab   :  { %v1633_v63 = vpop.eup %1632  ;;  %v2504_v62 = vld [vmem:[#allocation7 + $0xe8] sm:$0xff] }
 0x1ac   :  { %v655_v14 = vadd.f32 1.0, %v1633_v63  ;;  %v2459_v63 = vld [vmem:[#allocation7 + $0x170] sm:$0xff] }
 0x1ad   :  { %v1635_v58 = vpop.eup %1634 }
 0x1ae   :  { %v1637_v1 = vpop.eup %1636  ;;  %v618_v50 = vmul.f32 %v1635_v58, %v616_v48  ;;  %1638 = vrcp.f32 %v655_v14  ;;  %vm623_vm12 = vweird.f32 %v1635_v58  ;;  %v667_v16 = vand.u32 2147483648, %v655_v14  ;;  %v2450_v48 = vld [vmem:[#allocation7 + $0x198] sm:$0xff] }
 0x1af   :  { %v637_v45 = vmul.f32 %v1637_v1, %v635_v56  ;;  %1640 = vtanh.f32 %v611_v51  ;;  %vm642_vm13 = vweird.f32 %v1637_v1  ;;  %vm624_vm0 = vmor %vm622_vm14, %vm623_vm12  ;;  %vm661_vm5 = vweird.f32 %v655_v14  ;;  %v2453_v56 = vld [vmem:[#allocation7 + $0x160] sm:$0xff]  ;;  %v2471_v51 = vld [vmem:[#allocation7 + $0x150] sm:$0xff] }
 0x1b0   :  { %v619_v46 = vsub.f32 1.0, %v618_v50  ;;  %vm643_vm1 = vmor %vm641_vm15, %vm642_vm13  ;;  %v665_v17 = vand.u32 2147483647, %v655_v14  ;;  %v668_v19 = vor.u32 1.1754944e-38, %v667_v16  ;;  %v2477_v50 = vld [vmem:[#allocation7 + $0x120] sm:$0xff]  ;;  %v2555_v16 = vld [vmem:[#allocation7 + $0x70] sm:$0xff] }
 0x1b1   :  { %v638_v0 = vsub.f32 1.0, %v637_v45  ;;  %v2480_v45 = vld [vmem:[#allocation7 + $0x128] sm:$0xff]  ;;  %3032 = vst [vmem:[#allocation23_spill] sm:$0xff] %v2555_v16 }
 0x1b2   :  { %v620_v54 = vmul.f32 %v1635_v58, %v619_v46  ;;  %vm666_vm7 = vcmp.eq.f32.partialorder %v665_v17, 8.507059e+37  ;;  %v2483_v46 = vld [vmem:[#allocation7 + $0x130] sm:$0xff]  ;;  %v2558_v17 = vld [vmem:[#allocation7 + $0x78] sm:$0xff] }
 0x1b3   :  { %v639_v57 = vmul.f32 %v1637_v1, %v638_v0  ;;  %v2486_v0 = vld [vmem:[#allocation7 + $0x138] sm:$0xff]  ;;  %3033 = vst [vmem:[#allocation22_spill] sm:$0xff] %v2558_v17 }
 0x1b4   :  { %v1639_v55 = vpop.eup %1638  ;;  %v621_v59 = vadd.f32 %v1635_v58, %v620_v54  ;;  %v2495_v54 = vld [vmem:[#allocation7 + $0x110] sm:$0xff] }
 0x1b5   :  { %v640_v61 = vadd.f32 %v1637_v1, %v639_v57  ;;  %v657_v2 = vmul.f32 %v1639_v55, %v655_v14  ;;  %v1641_v5 = vpop.eup %1640  ;;  %vm662_vm4 = vweird.f32 %v1639_v55  ;;  %v2462_v14 = vld [vmem:[#allocation7 + $0x178] sm:$0xff]  ;;  %v2501_v57 = vld [vmem:[#allocation7 + $0xe0] sm:$0xff] }
 0x1b6   :  { %v625_v4 = vsel %vm624_vm0, %v1635_v58, %v621_v59  ;;  %vm663_vm6 = vmor %vm661_vm5, %vm662_vm4  ;;  %v2465_v58 = vld [vmem:[#allocation7 + $0x140] sm:$0xff]  ;;  %v2510_v59 = vld [vmem:[#allocation7 + $0xf8] sm:$0xff] }
 0x1b7   :  { %v630_v6 = vsel %vm627_vm2, %v629_v60, %v625_v4  ;;  %v644_v7 = vsel %vm643_vm1, %v1637_v1, %v640_v61  ;;  %v658_v8 = vsub.f32 1.0, %v657_v2  ;;  %v2474_v1 = vld [vmem:[#allocation7 + $0x158] sm:$0xff]  ;;  %v2513_v60 = vld [vmem:[#allocation7 + $0xc0] sm:$0xff]  ;;  %v2516_v61 = vld [vmem:[#allocation7 + $0xc8] sm:$0xff] }
 0x1b8   :  { %v649_v9 = vsel %vm646_vm3, %v648_v3, %v644_v7  ;;  %v672_v10 = vmul.f32 %v1641_v5, %v630_v6  ;;  %v2519_v2 = vld [vmem:[#allocation7 + $0xd0] sm:$0xff]  ;;  %v2522_v3 = vld [vmem:[#allocation7 + $0xd8] sm:$0xff]  ;;  %v2525_v4 = vld [vmem:[#allocation7 + $0xa0] sm:$0xff] }
 0x1b9   :  { %v671_v11 = vmul.f32 %v649_v9, %v2330_v40  ;;  %v659_v12 = vmul.f32 %v1639_v55, %v658_v8  ;;  %v2405_v40 = vld [vmem:[#allocation7 + $0x1e0] sm:$0xff]  ;;  %3020 = vst [vmem:[#allocation11_spill] sm:$0xff] %v2519_v2  ;;  %v2528_v5 = vld [vmem:[#allocation7 + $0xa8] sm:$0xff]  ;;  %v2531_v6 = vld [vmem:[#allocation7 + $0xb0] sm:$0xff] }
 0x1ba   :  { %3021 = vst [vmem:[#allocation10_spill] sm:$0xff] %v2522_v3  ;;  %v2534_v7 = vld [vmem:[#allocation7 + $0xb8] sm:$0xff]  ;;  %v2537_v8 = vld [vmem:[#allocation7 + $0x80] sm:$0xff]  ;;  %v2540_v9 = vld [vmem:[#allocation7 + $0x88] sm:$0xff] }
 0x1bb   :  { %v2402_v13 = vadd.f32 %v672_v10, %v671_v11  ;;  %v660_v15 = vadd.f32 %v1639_v55, %v659_v12  ;;  %3022 = vst [vmem:[#allocation12_spill] sm:$0xff] %v2525_v4  ;;  %v2543_v10 = vld [vmem:[#allocation7 + $0x90] sm:$0xff]  ;;  %v2546_v11 = vld [vmem:[#allocation7 + $0x98] sm:$0xff]  ;;  %v2549_v12 = vld [vmem:[#allocation7 + $0x60] sm:$0xff] }
 0x1bc   :  { %3023 = vst [vmem:[#allocation13_spill] sm:$0xff] %v2528_v5 }
 0x1bd   :  { %1642 = vtanh.f32 %v2402_v13  ;;  %v664_v18 = vsel %vm663_vm6, %v1639_v55, %v660_v15  ;;  %v2507_v55 = vld [vmem:[#allocation7 + $0xf0] sm:$0xff]  ;;  %3024 = vst [vmem:[#allocation15_spill] sm:$0xff] %v2531_v6  ;;  %v2552_v15 = vld [vmem:[#allocation7 + $0x68] sm:$0xff] }
 0x1be   :  { %v669_v21 = vsel %vm666_vm7, %v668_v19, %v664_v18  ;;  %3025 = vst [vmem:[#allocation14_spill] sm:$0xff] %v2534_v7  ;;  %v2561_v18 = vld [vmem:[#allocation7 + $0x40] sm:$0xff]  ;;  %v2564_v19 = vld [vmem:[#allocation7 + $0x48] sm:$0xff] }
 0x1bf   :  { %3026 = vst [vmem:[#allocation16_spill] sm:$0xff] %v2537_v8 }
 0x1c0   :  { %3027 = vst [vmem:[#allocation17_spill] sm:$0xff] %v2540_v9 }
 0x1c1   :  { %3028 = vst [vmem:[#allocation19_spill] sm:$0xff] %v2543_v10 }
 0x1c2   :  { %3029 = vst [vmem:[#allocation18_spill] sm:$0xff] %v2546_v11 }
 0x1c3   :  { %v1643_v20 = vpop.eup %1642  ;;  %3030 = vst [vmem:[#allocation20_spill] sm:$0xff] %v2549_v12 }
 0x1c4   :  { %v675_v22 = vmul.f32 %v1643_v20, %v669_v21  ;;  %3031 = vst [vmem:[#allocation21_spill] sm:$0xff] %v2552_v15  ;;  %v2567_v20 = vld [vmem:[#allocation7 + $0x50] sm:$0xff]  ;;  %v2570_v21 = vld [vmem:[#allocation7 + $0x58] sm:$0xff] }
 0x1c5   :  { %3034 = vst [vmem:[#allocation24_spill] sm:$0xff] %v2561_v18 }
 0x1c6   :  { %692 = vmatmul.f32.vlgmr.msrb.gmra.mxu0 %v675_v22  ;;  %712 = vmatmul.f32.vlgmr.msrb.gmra.mxu1 %v675_v22  ;;  %3035 = vst [vmem:[#allocation25_spill] sm:$0xff] %v2564_v19 }
 0x1c7   :  { %732 = vmatmul.f32.vlgmr.msrb.gmra.mxu2 %v675_v22  ;;  %752 = vmatmul.f32.vlgmr.msrb.gmra.mxu3 %v675_v22  ;;  %3036 = vst [vmem:[#allocation27_spill] sm:$0xff] %v2567_v20  ;;  %v2573_v22 = vld [vmem:[#allocation7 + $0x20] sm:$0xff] }
 0x1c8   :  { %970 = vmatpush.msrb.mxu0 %v2405_v40  ;;  %990 = vmatpush.msrb.mxu1 %v2408_v30  ;;  %3037 = vst [vmem:[#allocation26_spill] sm:$0xff] %v2570_v21 }
 0x1c9   :  { %1010 = vmatpush.msrb.mxu2 %v2411_v31  ;;  %1030 = vmatpush.msrb.mxu3 %v2414_v32  ;;  %3038 = vst [vmem:[#allocation28_spill] sm:$0xff] %v2573_v22 }
 0x1ca   :  { %971 = vmatpush.msrb.mxu0 %v2417_v33  ;;  %991 = vmatpush.msrb.mxu1 %v2420_v34 }
 0x1cb   :  { %1011 = vmatpush.msrb.mxu2 %v2423_v35  ;;  %1031 = vmatpush.msrb.mxu3 %v2426_v36 }
 0x1cc   :  { %972 = vmatpush.msrb.mxu0 %v2429_v37  ;;  %992 = vmatpush.msrb.mxu1 %v2432_v38 }
 0x1cd   :  { %1012 = vmatpush.msrb.mxu2 %v2435_v39  ;;  %1032 = vmatpush.msrb.mxu3 %v2438_v41 }
 0x1ce   :  { %973 = vmatpush.msrb.mxu0 %v2441_v42  ;;  %993 = vmatpush.msrb.mxu1 %v2444_v43 }
 0x1cf   :  { %1013 = vmatpush.msrb.mxu2 %v2447_v44  ;;  %1033 = vmatpush.msrb.mxu3 %v2450_v48 }
 0x1d0   :  { %974 = vmatpush.msrb.mxu0 %v2453_v56  ;;  %994 = vmatpush.msrb.mxu1 %v2456_v47 }
 0x1d1   :  { %1014 = vmatpush.msrb.mxu2 %v2459_v63  ;;  %1034 = vmatpush.msrb.mxu3 %v2462_v14 }
 0x1d2   :  { %975 = vmatpush.msrb.mxu0 %v2465_v58  ;;  %995 = vmatpush.msrb.mxu1 %v2468_v53 }
 0x1d3   :  { %1015 = vmatpush.msrb.mxu2 %v2471_v51  ;;  %1035 = vmatpush.msrb.mxu3 %v2474_v1 }
 0x1d4   :  { %976 = vmatpush.msrb.mxu0 %v2477_v50  ;;  %996 = vmatpush.msrb.mxu1 %v2480_v45 }
 0x1d5   :  { %1016 = vmatpush.msrb.mxu2 %v2483_v46  ;;  %1036 = vmatpush.msrb.mxu3 %v2486_v0 }
 0x1d6   :  { %977 = vmatpush.msrb.mxu0 %v2489_v52  ;;  %997 = vmatpush.msrb.mxu1 %v2492_v27 }
 0x1d7   :  { %1017 = vmatpush.msrb.mxu2 %v2495_v54  ;;  %1037 = vmatpush.msrb.mxu3 %v2498_v49 }
 0x1d8   :  { %978 = vmatpush.msrb.mxu0 %v2501_v57  ;;  %998 = vmatpush.msrb.mxu1 %v2504_v62 }
 0x1d9   :  { %1018 = vmatpush.msrb.mxu2 %v2507_v55  ;;  %1038 = vmatpush.msrb.mxu3 %v2510_v59 }
 0x1da   :  { %979 = vmatpush.msrb.mxu0 %v2513_v60  ;;  %999 = vmatpush.msrb.mxu1 %v2516_v61 }
 0x1db   :  { %1019 = vmatpush.msrb.mxu2 %v2519_v2  ;;  %1039 = vmatpush.msrb.mxu3 %v2522_v3 }
 0x1dc   :  { %980 = vmatpush.msrb.mxu0 %v2525_v4  ;;  %1000 = vmatpush.msrb.mxu1 %v2528_v5 }
 0x1dd   :  { %1020 = vmatpush.msrb.mxu2 %v2531_v6  ;;  %1040 = vmatpush.msrb.mxu3 %v2534_v7 }
 0x1de   :  { %981 = vmatpush.msrb.mxu0 %v2537_v8  ;;  %1001 = vmatpush.msrb.mxu1 %v2540_v9 }
 0x1df   :  { %1021 = vmatpush.msrb.mxu2 %v2543_v10  ;;  %1041 = vmatpush.msrb.mxu3 %v2546_v11 }
 0x1e0   :  { %982 = vmatpush.msrb.mxu0 %v2549_v12  ;;  %1002 = vmatpush.msrb.mxu1 %v2552_v15 }
 0x1e1   :  { %1022 = vmatpush.msrb.mxu2 %v2555_v16  ;;  %1042 = vmatpush.msrb.mxu3 %v2558_v17  ;;  %v2576_v17 = vld [vmem:[#allocation7 + $0x28] sm:$0xff] }
 0x1e2   :  { %983 = vmatpush.msrb.mxu0 %v2561_v18  ;;  %1003 = vmatpush.msrb.mxu1 %v2564_v19  ;;  %3039 = vst [vmem:[#allocation29_spill] sm:$0xff] %v2576_v17  ;;  %v3040_v19 = vld [vmem:[#allocation40_spill] sm:$0xff]  ;;  %v3041_v18 = vld [vmem:[#allocation41_spill] sm:$0xff] }
 0x1e3   :  { %1023 = vmatpush.msrb.mxu2 %v2567_v20  ;;  %1043 = vmatpush.msrb.mxu3 %v2570_v21 }
 0x1e4   :  { %984 = vmatpush.msrb.mxu0 %v2573_v22  ;;  %1004 = vmatpush.msrb.mxu1 %v2576_v17 }
 0x1e5   :  { %1024 = vmatpush.msrb.mxu2 %v3010_v23  ;;  %1044 = vmatpush.msrb.mxu3 %v3011_v24  ;;  %v3042_v24 = vld [vmem:[#allocation43_spill] sm:$0xff] }
 0x1e6   :  { %985 = vmatpush.msrb.mxu0 %v3012_v25  ;;  %1005 = vmatpush.msrb.mxu1 %v3013_v26 }
 0x1e7   :  { %1025 = vmatpush.msrb.mxu2 %v3014_v28  ;;  %1045 = vmatpush.msrb.mxu3 %v3015_v29 }
 0x243   :  { %v693_v21 = vpop.f32.mrf.mxu0  ;;  %v713_v20 = vpop.f32.mrf.mxu1 }
 0x244   :  { %v756_v22 = vadd.f32 %v693_v21, %v3040_v19  ;;  %v757_v16 = vadd.f32 %v713_v20, %v3041_v18  ;;  %v3043_v18 = vld [vmem:[#allocation42_spill] sm:$0xff] }
 0x246   :  { %v1584_v15 = vmul.f32 -1.442695, %v756_v22  ;;  %v1585_v17 = vmul.f32 -1.442695, %v757_v16 }
 0x248   :  { %1644 = vpow2.f32 %v1584_v15 }
 0x249   :  { %1646 = vpow2.f32 %v1585_v17 }
 0x24a   :  { %v753_v23 = vpop.f32.mrf.mxu3  ;;  %v733_v29 = vpop.f32.mrf.mxu2 }
 0x24b   :  { %v759_v12 = vadd.f32 %v753_v23, %v3042_v24  ;;  %v758_v20 = vadd.f32 %v733_v29, %v3043_v18 }
 0x24d   :  { %v1586_v25 = vmul.f32 -1.442695, %v759_v12 }
 0x24e   :  { %v1645_v11 = vpop.eup %1644 }
 0x24f   :  { %v1647_v26 = vpop.eup %1646  ;;  %v763_v10 = vadd.f32 1.0, %v1645_v11  ;;  %1648 = vpow2.f32 %v1586_v25 }
 0x250   :  { %v782_v28 = vadd.f32 1.0, %v1647_v26 }
 0x251   :  { %1650 = vrcp.f32 %v763_v10  ;;  %v775_v12 = vand.u32 2147483648, %v763_v10  ;;  %v773_v25 = vand.u32 2147483647, %v763_v10  ;;  %vm769_vm10 = vweird.f32 %v763_v10 }
 0x252   :  { %1652 = vrcp.f32 %v782_v28  ;;  %v794_v24 = vand.u32 2147483648, %v782_v28  ;;  %v792_v8 = vand.u32 2147483647, %v782_v28  ;;  %vm788_vm11 = vweird.f32 %v782_v28 }
 0x253   :  { %v776_v29 = vor.u32 1.1754944e-38, %v775_v12  ;;  %vm774_vm14 = vcmp.eq.f32.partialorder %v773_v25, 8.507059e+37 }
 0x254   :  { %vm793_vm15 = vcmp.eq.f32.partialorder %v792_v8, 8.507059e+37 }
 0x255   :  { %v1649_v9 = vpop.eup %1648 }
 0x256   :  { %v802_v19 = vadd.f32 1.0, %v1649_v9 }
 0x257   :  { %v1651_v21 = vpop.eup %1650 }
 0x258   :  { %v1653_v16 = vpop.eup %1652  ;;  %v765_v15 = vmul.f32 %v1651_v21, %v763_v10  ;;  %1654 = vrcp.f32 %v802_v19  ;;  %vm770_vm8 = vweird.f32 %v1651_v21  ;;  %v814_v12 = vand.u32 2147483648, %v802_v19 }
 0x259   :  { %v784_v17 = vmul.f32 %v1653_v16, %v782_v28  ;;  %1656 = vtanh.f32 %v758_v20  ;;  %vm789_vm9 = vweird.f32 %v1653_v16  ;;  %vm771_vm12 = vmor %vm769_vm10, %vm770_vm8  ;;  %vm808_vm1 = vweird.f32 %v802_v19 }
 0x25a   :  { %v766_v22 = vsub.f32 1.0, %v765_v15  ;;  %vm790_vm13 = vmor %vm788_vm11, %vm789_vm9  ;;  %v795_v15 = vor.u32 1.1754944e-38, %v794_v24  ;;  %v815_v25 = vor.u32 1.1754944e-38, %v814_v12  ;;  %v3062_v12 = vld [vmem:[#allocation28_spill] sm:$0xff] }
 0x25b   :  { %v785_v23 = vsub.f32 1.0, %v784_v17 }
 0x25c   :  { %v767_v11 = vmul.f32 %v1651_v21, %v766_v22 }
 0x25d   :  { %v786_v26 = vmul.f32 %v1653_v16, %v785_v23 }
 0x25e   :  { %v1655_v7 = vpop.eup %1654  ;;  %v768_v9 = vadd.f32 %v1651_v21, %v767_v11 }
 0x25f   :  { %v787_v18 = vadd.f32 %v1653_v16, %v786_v26  ;;  %v804_v6 = vmul.f32 %v1655_v7, %v802_v19  ;;  %v1657_v20 = vpop.eup %1656  ;;  %vm809_vm0 = vweird.f32 %v1655_v7  ;;  %v3051_v26 = vld [vmem:[#allocation17_spill] sm:$0xff] }
 0x260   :  { %v772_v17 = vsel %vm771_vm12, %v1651_v21, %v768_v9  ;;  %v812_v21 = vand.u32 2147483647, %v802_v19  ;;  %vm810_vm2 = vmor %vm808_vm1, %vm809_vm0  ;;  %v3050_v19 = vld [vmem:[#allocation16_spill] sm:$0xff]  ;;  %v3052_v9 = vld [vmem:[#allocation19_spill] sm:$0xff] }
 0x261   :  { %v777_v5 = vsel %vm774_vm14, %v776_v29, %v772_v17  ;;  %v791_v22 = vsel %vm790_vm13, %v1653_v16, %v787_v18  ;;  %v805_v4 = vsub.f32 1.0, %v804_v6  ;;  %v3053_v29 = vld [vmem:[#allocation18_spill] sm:$0xff]  ;;  %v3054_v18 = vld [vmem:[#allocation20_spill] sm:$0xff]  ;;  %v3056_v17 = vld [vmem:[#allocation23_spill] sm:$0xff] }
 0x262   :  { %v796_v23 = vsel %vm793_vm15, %v795_v15, %v791_v22  ;;  %v819_v3 = vmul.f32 %v1657_v20, %v777_v5  ;;  %vm813_vm3 = vcmp.eq.f32.partialorder %v812_v21, 8.507059e+37  ;;  %v3048_v5 = vld [vmem:[#allocation15_spill] sm:$0xff]  ;;  %v3055_v15 = vld [vmem:[#allocation21_spill] sm:$0xff]  ;;  %v3057_v20 = vld [vmem:[#allocation22_spill] sm:$0xff] }
 0x263   :  { %v818_v2 = vmul.f32 %v796_v23, %v2402_v13  ;;  %v806_v11 = vmul.f32 %v1655_v7, %v805_v4  ;;  %v3044_v13 = vld [vmem:[#allocation11_spill] sm:$0xff]  ;;  %v3047_v4 = vld [vmem:[#allocation13_spill] sm:$0xff]  ;;  %v3058_v22 = vld [vmem:[#allocation24_spill] sm:$0xff] }
 0x264   :  { %v3059_v23 = vld [vmem:[#allocation25_spill] sm:$0xff] }
 0x265   :  { %v2590_v10 = vadd.f32 %v819_v3, %v818_v2  ;;  %v807_v28 = vadd.f32 %v1655_v7, %v806_v11  ;;  %v3045_v2 = vld [vmem:[#allocation10_spill] sm:$0xff]  ;;  %v3046_v3 = vld [vmem:[#allocation12_spill] sm:$0xff]  ;;  %v3060_v11 = vld [vmem:[#allocation27_spill] sm:$0xff] }
 0x266   :  { %v3063_v21 = vld [vmem:[#allocation29_spill] sm:$0xff] }
 0x267   :  { %1658 = vtanh.f32 %v2590_v10  ;;  %v811_v24 = vsel %vm810_vm2, %v1655_v7, %v807_v28  ;;  %v3049_v7 = vld [vmem:[#allocation14_spill] sm:$0xff] }
 0x268   :  { %v816_v6 = vsel %vm813_vm3, %v815_v25, %v811_v24  ;;  %v3061_v28 = vld [vmem:[#allocation26_spill] sm:$0xff]  ;;  %v2651_v24 = vld [vmem:[#allocation7 + $0x30] sm:$0xff]  ;;  %v2654_v25 = vld [vmem:[#allocation7 + $0x38] sm:$0xff] }
 0x269   :  { %3064 = vst [vmem:[#allocation30_spill] sm:$0xff] %v2651_v24 }
 0x26a   :  { %3065 = vst [vmem:[#allocation31_spill] sm:$0xff] %v2654_v25 }
 0x26d   :  { %v1659_v8 = vpop.eup %1658 }
 0x26e   :  { %v822_v16 = vmul.f32 %v1659_v8, %v816_v6  ;;  %v2657_v8 = vld [vmem:[#allocation7] sm:$0xff]  ;;  %v2660_v6 = vld [vmem:[#allocation7 + $0x8] sm:$0xff] }
 0x26f   :  { %3066 = vst [vmem:[#allocation32_spill] sm:$0xff] %v2657_v8 }
 0x270   :  { %839 = vmatmul.f32.vlgmr.msra.gmra.mxu0 %v822_v16  ;;  %859 = vmatmul.f32.vlgmr.msra.gmra.mxu1 %v822_v16  ;;  %3067 = vst [vmem:[#allocation33_spill] sm:$0xff] %v2660_v6 }
 0x271   :  { %879 = vmatmul.f32.vlgmr.msra.gmra.mxu2 %v822_v16  ;;  %899 = vmatmul.f32.vlgmr.msra.gmra.mxu3 %v822_v16  ;;  %v2663_v16 = vld [vmem:[#allocation7 + $0x10] sm:$0xff] }
 0x272   :  { %1117 = vmatpush.msra.mxu0 %v2405_v40  ;;  %1137 = vmatpush.msra.mxu1 %v2408_v30  ;;  %3068 = vst [vmem:[#allocation34_spill] sm:$0xff] %v2663_v16 }
 0x273   :  { %1157 = vmatpush.msra.mxu2 %v2411_v31  ;;  %1177 = vmatpush.msra.mxu3 %v2414_v32 }
 0x274   :  { %1118 = vmatpush.msra.mxu0 %v2417_v33  ;;  %1138 = vmatpush.msra.mxu1 %v2420_v34 }
 0x275   :  { %1158 = vmatpush.msra.mxu2 %v2423_v35  ;;  %1178 = vmatpush.msra.mxu3 %v2426_v36 }
 0x276   :  { %1119 = vmatpush.msra.mxu0 %v2429_v37  ;;  %1139 = vmatpush.msra.mxu1 %v2432_v38 }
 0x277   :  { %1159 = vmatpush.msra.mxu2 %v2435_v39  ;;  %1179 = vmatpush.msra.mxu3 %v2438_v41 }
 0x278   :  { %1120 = vmatpush.msra.mxu0 %v2441_v42  ;;  %1140 = vmatpush.msra.mxu1 %v2444_v43 }
 0x279   :  { %1160 = vmatpush.msra.mxu2 %v2447_v44  ;;  %1180 = vmatpush.msra.mxu3 %v2450_v48 }
 0x27a   :  { %1121 = vmatpush.msra.mxu0 %v2453_v56  ;;  %1141 = vmatpush.msra.mxu1 %v2456_v47 }
 0x27b   :  { %1161 = vmatpush.msra.mxu2 %v2459_v63  ;;  %1181 = vmatpush.msra.mxu3 %v2462_v14 }
 0x27c   :  { %1122 = vmatpush.msra.mxu0 %v2465_v58  ;;  %1142 = vmatpush.msra.mxu1 %v2468_v53 }
 0x27d   :  { %1162 = vmatpush.msra.mxu2 %v2471_v51  ;;  %1182 = vmatpush.msra.mxu3 %v2474_v1 }
 0x27e   :  { %1123 = vmatpush.msra.mxu0 %v2477_v50  ;;  %1143 = vmatpush.msra.mxu1 %v2480_v45 }
 0x27f   :  { %1163 = vmatpush.msra.mxu2 %v2483_v46  ;;  %1183 = vmatpush.msra.mxu3 %v2486_v0 }
 0x280   :  { %1124 = vmatpush.msra.mxu0 %v2489_v52  ;;  %1144 = vmatpush.msra.mxu1 %v2492_v27 }
 0x281   :  { %1164 = vmatpush.msra.mxu2 %v2495_v54  ;;  %1184 = vmatpush.msra.mxu3 %v2498_v49 }
 0x282   :  { %1125 = vmatpush.msra.mxu0 %v2501_v57  ;;  %1145 = vmatpush.msra.mxu1 %v2504_v62 }
 0x283   :  { %1165 = vmatpush.msra.mxu2 %v2507_v55  ;;  %1185 = vmatpush.msra.mxu3 %v2510_v59 }
 0x284   :  { %1126 = vmatpush.msra.mxu0 %v2513_v60  ;;  %1146 = vmatpush.msra.mxu1 %v2516_v61 }
 0x285   :  { %1166 = vmatpush.msra.mxu2 %v3044_v13  ;;  %1186 = vmatpush.msra.mxu3 %v3045_v2 }
 0x286   :  { %1127 = vmatpush.msra.mxu0 %v3046_v3  ;;  %1147 = vmatpush.msra.mxu1 %v3047_v4 }
 0x287   :  { %1167 = vmatpush.msra.mxu2 %v3048_v5  ;;  %1187 = vmatpush.msra.mxu3 %v3049_v7 }
 0x288   :  { %1128 = vmatpush.msra.mxu0 %v3050_v19  ;;  %1148 = vmatpush.msra.mxu1 %v3051_v26 }
 0x289   :  { %1168 = vmatpush.msra.mxu2 %v3052_v9  ;;  %1188 = vmatpush.msra.mxu3 %v3053_v29 }
 0x28a   :  { %1129 = vmatpush.msra.mxu0 %v3054_v18  ;;  %1149 = vmatpush.msra.mxu1 %v3055_v15 }
 0x28b   :  { %1169 = vmatpush.msra.mxu2 %v3056_v17  ;;  %1189 = vmatpush.msra.mxu3 %v3057_v20 }
 0x28c   :  { %1130 = vmatpush.msra.mxu0 %v3058_v22  ;;  %1150 = vmatpush.msra.mxu1 %v3059_v23 }
 0x28d   :  { %1170 = vmatpush.msra.mxu2 %v3060_v11  ;;  %1190 = vmatpush.msra.mxu3 %v3061_v28  ;;  %v3070_v28 = vld [vmem:[#allocation44_spill] sm:$0xff]  ;;  %v3071_v11 = vld [vmem:[#allocation45_spill] sm:$0xff] }
 0x28e   :  { %1131 = vmatpush.msra.mxu0 %v3062_v12  ;;  %1151 = vmatpush.msra.mxu1 %v3063_v21  ;;  %v2666_v21 = vld [vmem:[#allocation7 + $0x18] sm:$0xff] }
 0x28f   :  { %1171 = vmatpush.msra.mxu2 %v2651_v24  ;;  %1191 = vmatpush.msra.mxu3 %v2654_v25  ;;  %3069 = vst [vmem:[#allocation35_spill] sm:$0xff] %v2666_v21 }
 0x290   :  { %1132 = vmatpush.msra.mxu0 %v2657_v8  ;;  %1152 = vmatpush.msra.mxu1 %v2660_v6  ;;  %v3072_v6 = vld [vmem:[#allocation47_spill] sm:$0xff] }
 0x291   :  { %1172 = vmatpush.msra.mxu2 %v2663_v16  ;;  %1192 = vmatpush.msra.mxu3 %v2666_v21 }
 0x2ed   :  { %v840_v24 = vpop.f32.mrf.mxu0  ;;  %v860_v12 = vpop.f32.mrf.mxu1 }
 0x2ee   :  { %v903_v25 = vadd.f32 %v840_v24, %v3070_v28  ;;  %v904_v23 = vadd.f32 %v860_v12, %v3071_v11  ;;  %v3073_v11 = vld [vmem:[#allocation46_spill] sm:$0xff] }
 0x2f0   :  { %v1587_v22 = vmul.f32 -1.442695, %v903_v25  ;;  %v1588_v8 = vmul.f32 -1.442695, %v904_v23 }
 0x2f2   :  { %1660 = vpow2.f32 %v1587_v22 }
 0x2f3   :  { %1662 = vpow2.f32 %v1588_v8 }
 0x2f4   :  { %v900_v20 = vpop.f32.mrf.mxu3  ;;  %v880_v21 = vpop.f32.mrf.mxu2 }
 0x2f5   :  { %v906_v17 = vadd.f32 %v900_v20, %v3072_v6  ;;  %v905_v12 = vadd.f32 %v880_v21, %v3073_v11 }
 0x2f7   :  { %v1589_v15 = vmul.f32 -1.442695, %v906_v17 }
 0x2f8   :  { %v1661_v18 = vpop.eup %1660 }
 0x2f9   :  { %v1663_v16 = vpop.eup %1662  ;;  %v910_v29 = vadd.f32 1.0, %v1661_v18  ;;  %1664 = vpow2.f32 %v1589_v15 }
 0x2fa   :  { %v929_v9 = vadd.f32 1.0, %v1663_v16 }
 0x2fb   :  { %1666 = vrcp.f32 %v910_v29  ;;  %v922_v17 = vand.u32 2147483648, %v910_v29  ;;  %v920_v15 = vand.u32 2147483647, %v910_v29  ;;  %vm916_vm6 = vweird.f32 %v910_v29 }
 0x2fc   :  { %1668 = vrcp.f32 %v929_v9  ;;  %v941_v6 = vand.u32 2147483648, %v929_v9  ;;  %v939_v19 = vand.u32 2147483647, %v929_v9  ;;  %vm935_vm7 = vweird.f32 %v929_v9 }
 0x2fd   :  { %v923_v21 = vor.u32 1.1754944e-38, %v922_v17  ;;  %vm921_vm10 = vcmp.eq.f32.partialorder %v920_v15, 8.507059e+37 }
 0x2fe   :  { %vm940_vm11 = vcmp.eq.f32.partialorder %v939_v19, 8.507059e+37 }
 0x2ff   :  { %v1665_v26 = vpop.eup %1664 }
 0x300   :  { %v949_v28 = vadd.f32 1.0, %v1665_v26 }
 0x301   :  { %v1667_v24 = vpop.eup %1666 }
 0x302   :  { %v1669_v23 = vpop.eup %1668  ;;  %v912_v22 = vmul.f32 %v1667_v24, %v910_v29  ;;  %1670 = vrcp.f32 %v949_v28  ;;  %vm917_vm4 = vweird.f32 %v1667_v24  ;;  %v961_v17 = vand.u32 2147483648, %v949_v28 }
 0x303   :  { %v931_v25 = vmul.f32 %v1669_v23, %v929_v9  ;;  %1672 = vtanh.f32 %v905_v12  ;;  %vm936_vm5 = vweird.f32 %v1669_v23  ;;  %vm918_vm8 = vmor %vm916_vm6, %vm917_vm4  ;;  %vm955_vm13 = vweird.f32 %v949_v28 }
 0x304   :  { %v913_v8 = vsub.f32 1.0, %v912_v22  ;;  %vm937_vm9 = vmor %vm935_vm7, %vm936_vm5  ;;  %v942_v22 = vor.u32 1.1754944e-38, %v941_v6  ;;  %v962_v15 = vor.u32 1.1754944e-38, %v961_v17  ;;  %v3092_v17 = vld [vmem:[#allocation28_spill] sm:$0xff] }
 0x305   :  { %v932_v20 = vsub.f32 1.0, %v931_v25 }
 0x306   :  { %v914_v18 = vmul.f32 %v1667_v24, %v913_v8 }
 0x307   :  { %v933_v16 = vmul.f32 %v1669_v23, %v932_v20 }
 0x308   :  { %v1671_v7 = vpop.eup %1670  ;;  %v915_v26 = vadd.f32 %v1667_v24, %v914_v18 }
 0x309   :  { %v934_v11 = vadd.f32 %v1669_v23, %v933_v16  ;;  %v951_v5 = vmul.f32 %v1671_v7, %v949_v28  ;;  %v1673_v12 = vpop.eup %1672  ;;  %vm956_vm12 = vweird.f32 %v1671_v7  ;;  %v3081_v16 = vld [vmem:[#allocation17_spill] sm:$0xff] }
 0x30a   :  { %v919_v25 = vsel %vm918_vm8, %v1667_v24, %v915_v26  ;;  %v959_v24 = vand.u32 2147483647, %v949_v28  ;;  %vm957_vm14 = vmor %vm955_vm13, %vm956_vm12  ;;  %v3080_v28 = vld [vmem:[#allocation16_spill] sm:$0xff]  ;;  %v3082_v26 = vld [vmem:[#allocation19_spill] sm:$0xff] }
 0x30b   :  { %v924_v4 = vsel %vm921_vm10, %v923_v21, %v919_v25  ;;  %v938_v8 = vsel %vm937_vm9, %v1669_v23, %v934_v11  ;;  %v952_v3 = vsub.f32 1.0, %v951_v5  ;;  %v3083_v21 = vld [vmem:[#allocation18_spill] sm:$0xff]  ;;  %v3084_v11 = vld [vmem:[#allocation20_spill] sm:$0xff]  ;;  %v3086_v25 = vld [vmem:[#allocation23_spill] sm:$0xff] }
 0x30c   :  { %v943_v20 = vsel %vm940_vm11, %v942_v22, %v938_v8  ;;  %v966_v2 = vmul.f32 %v1673_v12, %v924_v4  ;;  %vm960_vm15 = vcmp.eq.f32.partialorder %v959_v24, 8.507059e+37  ;;  %v3078_v4 = vld [vmem:[#allocation15_spill] sm:$0xff]  ;;  %v3085_v22 = vld [vmem:[#allocation21_spill] sm:$0xff]  ;;  %v3087_v12 = vld [vmem:[#allocation22_spill] sm:$0xff] }
 0x30d   :  { %v965_v13 = vmul.f32 %v943_v20, %v2590_v10  ;;  %v953_v18 = vmul.f32 %v1671_v7, %v952_v3  ;;  %v3074_v10 = vld [vmem:[#allocation11_spill] sm:$0xff]  ;;  %v3077_v3 = vld [vmem:[#allocation13_spill] sm:$0xff]  ;;  %v3088_v8 = vld [vmem:[#allocation24_spill] sm:$0xff] }
 0x30e   :  { %v3089_v20 = vld [vmem:[#allocation25_spill] sm:$0xff] }
 0x30f   :  { %v2674_v29 = vadd.f32 %v966_v2, %v965_v13  ;;  %v954_v9 = vadd.f32 %v1671_v7, %v953_v18  ;;  %v3075_v13 = vld [vmem:[#allocation10_spill] sm:$0xff]  ;;  %v3076_v2 = vld [vmem:[#allocation12_spill] sm:$0xff]  ;;  %v3090_v18 = vld [vmem:[#allocation27_spill] sm:$0xff] }
 0x310   :  { %v3093_v24 = vld [vmem:[#allocation29_spill] sm:$0xff] }
 0x311   :  { %1674 = vtanh.f32 %v2674_v29  ;;  %v958_v6 = vsel %vm957_vm14, %v1671_v7, %v954_v9  ;;  %v3079_v7 = vld [vmem:[#allocation14_spill] sm:$0xff] }
 0x312   :  { %v963_v5 = vsel %vm960_vm15, %v962_v15, %v958_v6  ;;  %v3091_v9 = vld [vmem:[#allocation26_spill] sm:$0xff]  ;;  %v3095_v15 = vld [vmem:[#allocation31_spill] sm:$0xff] }
 0x313   :  { %v3094_v6 = vld [vmem:[#allocation30_spill] sm:$0xff] }
 0x317   :  { %v1675_v19 = vpop.eup %1674 }
 0x318   :  { %v969_v23 = vmul.f32 %v1675_v19, %v963_v5  ;;  %v3096_v19 = vld [vmem:[#allocation32_spill] sm:$0xff]  ;;  %v3097_v5 = vld [vmem:[#allocation33_spill] sm:$0xff] }
 0x31a   :  { %986 = vmatmul.f32.vlgmr.msrb.gmra.mxu0 %v969_v23  ;;  %1006 = vmatmul.f32.vlgmr.msrb.gmra.mxu1 %v969_v23 }
 0x31b   :  { %1026 = vmatmul.f32.vlgmr.msrb.gmra.mxu2 %v969_v23  ;;  %1046 = vmatmul.f32.vlgmr.msrb.gmra.mxu3 %v969_v23  ;;  %v3098_v23 = vld [vmem:[#allocation34_spill] sm:$0xff] }
 0x31c   :  { %1264 = vmatpush.msrb.mxu0 %v2405_v40  ;;  %1284 = vmatpush.msrb.mxu1 %v2408_v30 }
 0x31d   :  { %1304 = vmatpush.msrb.mxu2 %v2411_v31  ;;  %1324 = vmatpush.msrb.mxu3 %v2414_v32 }
 0x31e   :  { %1265 = vmatpush.msrb.mxu0 %v2417_v33  ;;  %1285 = vmatpush.msrb.mxu1 %v2420_v34 }
 0x31f   :  { %1305 = vmatpush.msrb.mxu2 %v2423_v35  ;;  %1325 = vmatpush.msrb.mxu3 %v2426_v36 }
 0x320   :  { %1266 = vmatpush.msrb.mxu0 %v2429_v37  ;;  %1286 = vmatpush.msrb.mxu1 %v2432_v38 }
 0x321   :  { %1306 = vmatpush.msrb.mxu2 %v2435_v39  ;;  %1326 = vmatpush.msrb.mxu3 %v2438_v41 }
 0x322   :  { %1267 = vmatpush.msrb.mxu0 %v2441_v42  ;;  %1287 = vmatpush.msrb.mxu1 %v2444_v43 }
 0x323   :  { %1307 = vmatpush.msrb.mxu2 %v2447_v44  ;;  %1327 = vmatpush.msrb.mxu3 %v2450_v48 }
 0x324   :  { %1268 = vmatpush.msrb.mxu0 %v2453_v56  ;;  %1288 = vmatpush.msrb.mxu1 %v2456_v47 }
 0x325   :  { %1308 = vmatpush.msrb.mxu2 %v2459_v63  ;;  %1328 = vmatpush.msrb.mxu3 %v2462_v14 }
 0x326   :  { %1269 = vmatpush.msrb.mxu0 %v2465_v58  ;;  %1289 = vmatpush.msrb.mxu1 %v2468_v53 }
 0x327   :  { %1309 = vmatpush.msrb.mxu2 %v2471_v51  ;;  %1329 = vmatpush.msrb.mxu3 %v2474_v1 }
 0x328   :  { %1270 = vmatpush.msrb.mxu0 %v2477_v50  ;;  %1290 = vmatpush.msrb.mxu1 %v2480_v45 }
 0x329   :  { %1310 = vmatpush.msrb.mxu2 %v2483_v46  ;;  %1330 = vmatpush.msrb.mxu3 %v2486_v0 }
 0x32a   :  { %1271 = vmatpush.msrb.mxu0 %v2489_v52  ;;  %1291 = vmatpush.msrb.mxu1 %v2492_v27 }
 0x32b   :  { %1311 = vmatpush.msrb.mxu2 %v2495_v54  ;;  %1331 = vmatpush.msrb.mxu3 %v2498_v49 }
 0x32c   :  { %1272 = vmatpush.msrb.mxu0 %v2501_v57  ;;  %1292 = vmatpush.msrb.mxu1 %v2504_v62 }
 0x32d   :  { %1312 = vmatpush.msrb.mxu2 %v2507_v55  ;;  %1332 = vmatpush.msrb.mxu3 %v2510_v59 }
 0x32e   :  { %1273 = vmatpush.msrb.mxu0 %v2513_v60  ;;  %1293 = vmatpush.msrb.mxu1 %v2516_v61 }
 0x32f   :  { %1313 = vmatpush.msrb.mxu2 %v3074_v10  ;;  %1333 = vmatpush.msrb.mxu3 %v3075_v13 }
 0x330   :  { %1274 = vmatpush.msrb.mxu0 %v3076_v2  ;;  %1294 = vmatpush.msrb.mxu1 %v3077_v3 }
 0x331   :  { %1314 = vmatpush.msrb.mxu2 %v3078_v4  ;;  %1334 = vmatpush.msrb.mxu3 %v3079_v7 }
 0x332   :  { %1275 = vmatpush.msrb.mxu0 %v3080_v28  ;;  %1295 = vmatpush.msrb.mxu1 %v3081_v16 }
 0x333   :  { %1315 = vmatpush.msrb.mxu2 %v3082_v26  ;;  %1335 = vmatpush.msrb.mxu3 %v3083_v21 }
 0x334   :  { %1276 = vmatpush.msrb.mxu0 %v3084_v11  ;;  %1296 = vmatpush.msrb.mxu1 %v3085_v22 }
 0x335   :  { %1316 = vmatpush.msrb.mxu2 %v3086_v25  ;;  %1336 = vmatpush.msrb.mxu3 %v3087_v12  ;;  %v3100_v12 = vld [vmem:[#allocation48_spill] sm:$0xff]  ;;  %v3101_v25 = vld [vmem:[#allocation49_spill] sm:$0xff] }
 0x336   :  { %1277 = vmatpush.msrb.mxu0 %v3088_v8  ;;  %1297 = vmatpush.msrb.mxu1 %v3089_v20  ;;  %v3099_v8 = vld [vmem:[#allocation35_spill] sm:$0xff] }
 0x337   :  { %1317 = vmatpush.msrb.mxu2 %v3090_v18  ;;  %1337 = vmatpush.msrb.mxu3 %v3091_v9 }
 0x338   :  { %1278 = vmatpush.msrb.mxu0 %v3092_v17  ;;  %1298 = vmatpush.msrb.mxu1 %v3093_v24 }
 0x339   :  { %1318 = vmatpush.msrb.mxu2 %v3094_v6  ;;  %1338 = vmatpush.msrb.mxu3 %v3095_v15  ;;  %v3102_v15 = vld [vmem:[#allocation51_spill] sm:$0xff] }
 0x33a   :  { %1279 = vmatpush.msrb.mxu0 %v3096_v19  ;;  %1299 = vmatpush.msrb.mxu1 %v3097_v5 }
 0x33b   :  { %1319 = vmatpush.msrb.mxu2 %v3098_v23  ;;  %1339 = vmatpush.msrb.mxu3 %v3099_v8 }
 0x397   :  { %v987_v20 = vpop.f32.mrf.mxu0  ;;  %v1007_v18 = vpop.f32.mrf.mxu1 }
 0x398   :  { %v1050_v9 = vadd.f32 %v987_v20, %v3100_v12  ;;  %v1051_v17 = vadd.f32 %v1007_v18, %v3101_v25  ;;  %v3103_v25 = vld [vmem:[#allocation50_spill] sm:$0xff] }
 0x39a   :  { %v1590_v22 = vmul.f32 -1.442695, %v1050_v9  ;;  %v1591_v24 = vmul.f32 -1.442695, %v1051_v17 }
 0x39c   :  { %1676 = vpow2.f32 %v1590_v22 }
 0x39d   :  { %1678 = vpow2.f32 %v1591_v24 }
 0x39e   :  { %v1047_v6 = vpop.f32.mrf.mxu3  ;;  %v1027_v8 = vpop.f32.mrf.mxu2 }
 0x39f   :  { %v1053_v11 = vadd.f32 %v1047_v6, %v3102_v15  ;;  %v1052_v18 = vadd.f32 %v1027_v8, %v3103_v25 }
 0x3a1   :  { %v1592_v19 = vmul.f32 -1.442695, %v1053_v11 }
 0x3a2   :  { %v1677_v21 = vpop.eup %1676 }
 0x3a3   :  { %v1679_v5 = vpop.eup %1678  ;;  %v1057_v26 = vadd.f32 1.0, %v1677_v21  ;;  %1680 = vpow2.f32 %v1592_v19 }
 0x3a4   :  { %v1076_v23 = vadd.f32 1.0, %v1679_v5 }
 0x3a5   :  { %1682 = vrcp.f32 %v1057_v26  ;;  %v1069_v11 = vand.u32 2147483648, %v1057_v26  ;;  %v1067_v19 = vand.u32 2147483647, %v1057_v26  ;;  %vm1063_vm2 = vweird.f32 %v1057_v26 }
 0x3a6   :  { %1684 = vrcp.f32 %v1076_v23  ;;  %v1088_v15 = vand.u32 2147483648, %v1076_v23  ;;  %v1086_v28 = vand.u32 2147483647, %v1076_v23  ;;  %vm1082_vm3 = vweird.f32 %v1076_v23 }
 0x3a7   :  { %v1070_v8 = vor.u32 1.1754944e-38, %v1069_v11  ;;  %vm1068_vm6 = vcmp.eq.f32.partialorder %v1067_v19, 8.507059e+37 }
 0x3a8   :  { %vm1087_vm7 = vcmp.eq.f32.partialorder %v1086_v28, 8.507059e+37 }
 0x3a9   :  { %v1681_v16 = vpop.eup %1680 }
 0x3aa   :  { %v1096_v12 = vadd.f32 1.0, %v1681_v16 }
 0x3ab   :  { %v1683_v20 = vpop.eup %1682 }
 0x3ac   :  { %v1685_v9 = vpop.eup %1684  ;;  %v1059_v22 = vmul.f32 %v1683_v20, %v1057_v26  ;;  %1686 = vrcp.f32 %v1096_v12  ;;  %vm1064_vm0 = vweird.f32 %v1683_v20  ;;  %v1108_v11 = vand.u32 2147483648, %v1096_v12 }
 0x3ad   :  { %v1078_v17 = vmul.f32 %v1685_v9, %v1076_v23  ;;  %1688 = vtanh.f32 %v1052_v18  ;;  %vm1083_vm1 = vweird.f32 %v1685_v9  ;;  %vm1065_vm4 = vmor %vm1063_vm2, %vm1064_vm0  ;;  %vm1102_vm9 = vweird.f32 %v1096_v12 }
 0x3ae   :  { %v1060_v24 = vsub.f32 1.0, %v1059_v22  ;;  %vm1084_vm5 = vmor %vm1082_vm3, %vm1083_vm1  ;;  %v1089_v22 = vor.u32 1.1754944e-38, %v1088_v15  ;;  %v1109_v19 = vor.u32 1.1754944e-38, %v1108_v11 }
 0x3af   :  { %v1079_v6 = vsub.f32 1.0, %v1078_v17 }
 0x3b0   :  { %v1061_v21 = vmul.f32 %v1683_v20, %v1060_v24 }
 0x3b1   :  { %v1080_v5 = vmul.f32 %v1685_v9, %v1079_v6 }
 0x3b2   :  { %v1687_v7 = vpop.eup %1686  ;;  %v1062_v16 = vadd.f32 %v1683_v20, %v1061_v21 }
 0x3b3   :  { %v1081_v25 = vadd.f32 %v1685_v9, %v1080_v5  ;;  %v1098_v4 = vmul.f32 %v1687_v7, %v1096_v12  ;;  %v1689_v18 = vpop.eup %1688  ;;  %vm1103_vm8 = vweird.f32 %v1687_v7 }
 0x3b4   :  { %v1066_v17 = vsel %vm1065_vm4, %v1683_v20, %v1062_v16  ;;  %v1106_v20 = vand.u32 2147483647, %v1096_v12  ;;  %vm1104_vm10 = vmor %vm1102_vm9, %vm1103_vm8  ;;  %v3133_v16 = vld [vmem:[#allocation54_spill] sm:$0xff] }
 0x3b5   :  { %v1071_v3 = vsel %vm1068_vm6, %v1070_v8, %v1066_v17  ;;  %v1085_v24 = vsel %vm1084_vm5, %v1685_v9, %v1081_v25  ;;  %v1099_v2 = vsub.f32 1.0, %v1098_v4 }
 0x3b6   :  { %v1090_v6 = vsel %vm1087_vm7, %v1089_v22, %v1085_v24  ;;  %v1113_v13 = vmul.f32 %v1689_v18, %v1071_v3  ;;  %vm1107_vm11 = vcmp.eq.f32.partialorder %v1106_v20, 8.507059e+37 }
 0x3b7   :  { %v1112_v10 = vmul.f32 %v1090_v6, %v2674_v29  ;;  %v1100_v21 = vmul.f32 %v1687_v7, %v1099_v2 }
 0x3b9   :  { %v2746_v26 = vadd.f32 %v1113_v13, %v1112_v10  ;;  %v1101_v23 = vadd.f32 %v1687_v7, %v1100_v21 }
 0x3bb   :  { %1690 = vtanh.f32 %v2746_v26  ;;  %v1105_v15 = vsel %vm1104_vm10, %v1687_v7, %v1101_v23 }
 0x3bc   :  { %v1110_v4 = vsel %vm1107_vm11, %v1109_v19, %v1105_v15 }
 0x3c1   :  { %v1691_v28 = vpop.eup %1690 }
 0x3c2   :  { %v1116_v9 = vmul.f32 %v1691_v28, %v1110_v4 }
 0x3c4   :  { %1133 = vmatmul.f32.vlgmr.msra.gmra.mxu0 %v1116_v9  ;;  %1153 = vmatmul.f32.vlgmr.msra.gmra.mxu1 %v1116_v9 }
 0x3c5   :  { %1173 = vmatmul.f32.vlgmr.msra.gmra.mxu2 %v1116_v9  ;;  %1193 = vmatmul.f32.vlgmr.msra.gmra.mxu3 %v1116_v9 }
 0x3c6   :  { %1411 = vmatpush.msra.mxu0 %v2405_v40  ;;  %1431 = vmatpush.msra.mxu1 %v2408_v30  ;;  %v3104_v40 = vld [vmem:[#allocation11_spill] sm:$0xff]  ;;  %v3105_v30 = vld [vmem:[#allocation10_spill] sm:$0xff] }
 0x3c7   :  { %1451 = vmatpush.msra.mxu2 %v2411_v31  ;;  %1471 = vmatpush.msra.mxu3 %v2414_v32  ;;  %v3106_v31 = vld [vmem:[#allocation12_spill] sm:$0xff]  ;;  %v3107_v32 = vld [vmem:[#allocation13_spill] sm:$0xff] }
 0x3c8   :  { %1412 = vmatpush.msra.mxu0 %v2417_v33  ;;  %1432 = vmatpush.msra.mxu1 %v2420_v34  ;;  %v3108_v33 = vld [vmem:[#allocation15_spill] sm:$0xff]  ;;  %v3109_v34 = vld [vmem:[#allocation14_spill] sm:$0xff] }
 0x3c9   :  { %1452 = vmatpush.msra.mxu2 %v2423_v35  ;;  %1472 = vmatpush.msra.mxu3 %v2426_v36  ;;  %v3110_v35 = vld [vmem:[#allocation16_spill] sm:$0xff]  ;;  %v3111_v36 = vld [vmem:[#allocation17_spill] sm:$0xff] }
 0x3ca   :  { %1413 = vmatpush.msra.mxu0 %v2429_v37  ;;  %1433 = vmatpush.msra.mxu1 %v2432_v38  ;;  %v3112_v37 = vld [vmem:[#allocation19_spill] sm:$0xff]  ;;  %v3113_v38 = vld [vmem:[#allocation18_spill] sm:$0xff] }
 0x3cb   :  { %1453 = vmatpush.msra.mxu2 %v2435_v39  ;;  %1473 = vmatpush.msra.mxu3 %v2438_v41  ;;  %v3114_v39 = vld [vmem:[#allocation20_spill] sm:$0xff]  ;;  %v3115_v41 = vld [vmem:[#allocation21_spill] sm:$0xff] }
 0x3cc   :  { %1414 = vmatpush.msra.mxu0 %v2441_v42  ;;  %1434 = vmatpush.msra.mxu1 %v2444_v43  ;;  %v3116_v42 = vld [vmem:[#allocation23_spill] sm:$0xff]  ;;  %v3117_v43 = vld [vmem:[#allocation22_spill] sm:$0xff] }
 0x3cd   :  { %1454 = vmatpush.msra.mxu2 %v2447_v44  ;;  %1474 = vmatpush.msra.mxu3 %v2450_v48  ;;  %v3118_v44 = vld [vmem:[#allocation24_spill] sm:$0xff]  ;;  %v3119_v48 = vld [vmem:[#allocation25_spill] sm:$0xff] }
 0x3ce   :  { %1415 = vmatpush.msra.mxu0 %v2453_v56  ;;  %1435 = vmatpush.msra.mxu1 %v2456_v47  ;;  %v3120_v56 = vld [vmem:[#allocation27_spill] sm:$0xff]  ;;  %v3121_v47 = vld [vmem:[#allocation26_spill] sm:$0xff] }
 0x3cf   :  { %1455 = vmatpush.msra.mxu2 %v2459_v63  ;;  %1475 = vmatpush.msra.mxu3 %v2462_v14  ;;  %v3122_v63 = vld [vmem:[#allocation28_spill] sm:$0xff]  ;;  %v3123_v14 = vld [vmem:[#allocation29_spill] sm:$0xff] }
 0x3d0   :  { %1416 = vmatpush.msra.mxu0 %v2465_v58  ;;  %1436 = vmatpush.msra.mxu1 %v2468_v53  ;;  %v3124_v58 = vld [vmem:[#allocation30_spill] sm:$0xff]  ;;  %v3125_v53 = vld [vmem:[#allocation31_spill] sm:$0xff] }
 0x3d1   :  { %1456 = vmatpush.msra.mxu2 %v2471_v51  ;;  %1476 = vmatpush.msra.mxu3 %v2474_v1  ;;  %v3126_v51 = vld [vmem:[#allocation32_spill] sm:$0xff]  ;;  %v3127_v1 = vld [vmem:[#allocation33_spill] sm:$0xff] }
 0x3d2   :  { %1417 = vmatpush.msra.mxu0 %v2477_v50  ;;  %1437 = vmatpush.msra.mxu1 %v2480_v45  ;;  %v3128_v50 = vld [vmem:[#allocation34_spill] sm:$0xff]  ;;  %v3129_v45 = vld [vmem:[#allocation35_spill] sm:$0xff] }
 0x3d3   :  { %1457 = vmatpush.msra.mxu2 %v2483_v46  ;;  %1477 = vmatpush.msra.mxu3 %v2486_v0 }
 0x3d4   :  { %1418 = vmatpush.msra.mxu0 %v2489_v52  ;;  %1438 = vmatpush.msra.mxu1 %v2492_v27  ;;  %v3130_v52 = vld [vmem:[#allocation52_spill] sm:$0xff] }
 0x3d5   :  { %1458 = vmatpush.msra.mxu2 %v2495_v54  ;;  %1478 = vmatpush.msra.mxu3 %v2498_v49  ;;  %v3131_v54 = vld [vmem:[#allocation53_spill] sm:$0xff] }
 0x3d6   :  { %1419 = vmatpush.msra.mxu0 %v2501_v57  ;;  %1439 = vmatpush.msra.mxu1 %v2504_v62 }
 0x3d7   :  { %1459 = vmatpush.msra.mxu2 %v2507_v55  ;;  %1479 = vmatpush.msra.mxu3 %v2510_v59  ;;  %v3132_v59 = vld [vmem:[#allocation55_spill] sm:$0xff] }
 0x3d8   :  { %1420 = vmatpush.msra.mxu0 %v2513_v60  ;;  %1440 = vmatpush.msra.mxu1 %v2516_v61 }
 0x3d9   :  { %1460 = vmatpush.msra.mxu2 %v3104_v40  ;;  %1480 = vmatpush.msra.mxu3 %v3105_v30 }
 0x3da   :  { %1421 = vmatpush.msra.mxu0 %v3106_v31  ;;  %1441 = vmatpush.msra.mxu1 %v3107_v32 }
 0x3db   :  { %1461 = vmatpush.msra.mxu2 %v3108_v33  ;;  %1481 = vmatpush.msra.mxu3 %v3109_v34 }
 0x3dc   :  { %1422 = vmatpush.msra.mxu0 %v3110_v35  ;;  %1442 = vmatpush.msra.mxu1 %v3111_v36 }
 0x3dd   :  { %1462 = vmatpush.msra.mxu2 %v3112_v37  ;;  %1482 = vmatpush.msra.mxu3 %v3113_v38 }
 0x3de   :  { %1423 = vmatpush.msra.mxu0 %v3114_v39  ;;  %1443 = vmatpush.msra.mxu1 %v3115_v41 }
 0x3df   :  { %1463 = vmatpush.msra.mxu2 %v3116_v42  ;;  %1483 = vmatpush.msra.mxu3 %v3117_v43 }
 0x3e0   :  { %1424 = vmatpush.msra.mxu0 %v3118_v44  ;;  %1444 = vmatpush.msra.mxu1 %v3119_v48 }
 0x3e1   :  { %1464 = vmatpush.msra.mxu2 %v3120_v56  ;;  %1484 = vmatpush.msra.mxu3 %v3121_v47 }
 0x3e2   :  { %1425 = vmatpush.msra.mxu0 %v3122_v63  ;;  %1445 = vmatpush.msra.mxu1 %v3123_v14 }
 0x3e3   :  { %1465 = vmatpush.msra.mxu2 %v3124_v58  ;;  %1485 = vmatpush.msra.mxu3 %v3125_v53  ;;  %v3134_v53 = vld [vmem:[#allocation56_spill] sm:$0xff] }
 0x3e4   :  { %1426 = vmatpush.msra.mxu0 %v3126_v51  ;;  %1446 = vmatpush.msra.mxu1 %v3127_v1  ;;  %v3135_v1 = vld [vmem:[#allocation57_spill] sm:$0xff] }
 0x3e5   :  { %1466 = vmatpush.msra.mxu2 %v3128_v50  ;;  %1486 = vmatpush.msra.mxu3 %v3129_v45 }
 0x441   :  { %v1134_v46 = vpop.f32.mrf.mxu0  ;;  %v1154_v0 = vpop.f32.mrf.mxu1 }
 0x442   :  { %v1197_v27 = vadd.f32 %v1134_v46, %v3130_v52  ;;  %v1198_v49 = vadd.f32 %v1154_v0, %v3131_v54  ;;  %v3136_v52 = vld [vmem:[#allocation59_spill] sm:$0xff] }
 0x444   :  { %v1593_v57 = vmul.f32 -1.442695, %v1197_v27  ;;  %v1594_v62 = vmul.f32 -1.442695, %v1198_v49 }
 0x446   :  { %1692 = vpow2.f32 %v1593_v57 }
 0x447   :  { %1694 = vpow2.f32 %v1594_v62 }
 0x448   :  { %v1194_v55 = vpop.f32.mrf.mxu3  ;;  %v1174_v3 = vpop.f32.mrf.mxu2 }
 0x449   :  { %v1200_v60 = vadd.f32 %v1194_v55, %v3132_v59  ;;  %v1199_v8 = vadd.f32 %v1174_v3, %v3133_v16 }
 0x44b   :  { %v1595_v61 = vmul.f32 -1.442695, %v1200_v60 }
 0x44c   :  { %v1693_v29 = vpop.eup %1692 }
 0x44d   :  { %v1695_v10 = vpop.eup %1694  ;;  %v1204_v13 = vadd.f32 1.0, %v1693_v29  ;;  %1696 = vpow2.f32 %v1595_v61 }
 0x44e   :  { %v1223_v2 = vadd.f32 1.0, %v1695_v10  ;;  %v3137_v10 = vld [vmem:[#allocation58_spill] sm:$0xff] }
 0x44f   :  { %1698 = vrcp.f32 %v1204_v13  ;;  %v1216_v6 = vand.u32 2147483648, %v1204_v13  ;;  %v1214_v11 = vand.u32 2147483647, %v1204_v13  ;;  %vm1210_vm14 = vweird.f32 %v1204_v13 }
 0x450   :  { %1700 = vrcp.f32 %v1223_v2  ;;  %v1235_v21 = vand.u32 2147483648, %v1223_v2  ;;  %v1233_v15 = vand.u32 2147483647, %v1223_v2  ;;  %vm1229_vm15 = vweird.f32 %v1223_v2 }
 0x451   :  { %v1217_v4 = vor.u32 1.1754944e-38, %v1216_v6  ;;  %vm1215_vm2 = vcmp.eq.f32.partialorder %v1214_v11, 8.507059e+37 }
 0x452   :  { %v1236_v30 = vor.u32 1.1754944e-38, %v1235_v21  ;;  %vm1234_vm3 = vcmp.eq.f32.partialorder %v1233_v15, 8.507059e+37 }
 0x453   :  { %v1697_v7 = vpop.eup %1696 }
 0x454   :  { %v1243_v12 = vadd.f32 1.0, %v1697_v7 }
 0x455   :  { %v1699_v5 = vpop.eup %1698 }
 0x456   :  { %v1701_v25 = vpop.eup %1700  ;;  %v1206_v22 = vmul.f32 %v1699_v5, %v1204_v13  ;;  %1702 = vrcp.f32 %v1243_v12  ;;  %vm1211_vm12 = vweird.f32 %v1699_v5  ;;  %v1255_v43 = vand.u32 2147483648, %v1243_v12 }
 0x457   :  { %v1225_v17 = vmul.f32 %v1701_v25, %v1223_v2  ;;  %1704 = vtanh.f32 %v1199_v8  ;;  %vm1230_vm13 = vweird.f32 %v1701_v25  ;;  %vm1212_vm0 = vmor %vm1210_vm14, %vm1211_vm12  ;;  %vm1249_vm5 = vweird.f32 %v1243_v12 }
 0x458   :  { %v1207_v18 = vsub.f32 1.0, %v1206_v22  ;;  %vm1231_vm1 = vmor %vm1229_vm15, %vm1230_vm13  ;;  %v1253_v44 = vand.u32 2147483647, %v1243_v12  ;;  %v1256_v56 = vor.u32 1.1754944e-38, %v1255_v43 }
 0x459   :  { %v1226_v24 = vsub.f32 1.0, %v1225_v17 }
 0x45a   :  { %v1208_v23 = vmul.f32 %v1699_v5, %v1207_v18  ;;  %vm1254_vm7 = vcmp.eq.f32.partialorder %v1253_v44, 8.507059e+37 }
 0x45b   :  { %v1227_v20 = vmul.f32 %v1701_v25, %v1226_v24 }
 0x45c   :  { %v1703_v19 = vpop.eup %1702  ;;  %v1209_v28 = vadd.f32 %v1699_v5, %v1208_v23 }
 0x45d   :  { %v1228_v9 = vadd.f32 %v1701_v25, %v1227_v20  ;;  %v1245_v40 = vmul.f32 %v1703_v19, %v1243_v12  ;;  %v1705_v32 = vpop.eup %1704  ;;  %vm1250_vm4 = vweird.f32 %v1703_v19 }
 0x45e   :  { %v1213_v31 = vsel %vm1212_vm0, %v1699_v5, %v1209_v28  ;;  %vm1251_vm6 = vmor %vm1249_vm5, %vm1250_vm4 }
 0x45f   :  { %v1218_v33 = vsel %vm1215_vm2, %v1217_v4, %v1213_v31  ;;  %v1232_v34 = vsel %vm1231_vm1, %v1701_v25, %v1228_v9  ;;  %v1246_v35 = vsub.f32 1.0, %v1245_v40 }
 0x460   :  { %v1237_v36 = vsel %vm1234_vm3, %v1236_v30, %v1232_v34  ;;  %v1260_v37 = vmul.f32 %v1705_v32, %v1218_v33 }
 0x461   :  { %v1259_v38 = vmul.f32 %v1237_v36, %v2746_v26  ;;  %v1247_v39 = vmul.f32 %v1703_v19, %v1246_v35 }
 0x463   :  { %v2818_v41 = vadd.f32 %v1260_v37, %v1259_v38  ;;  %v1248_v42 = vadd.f32 %v1703_v19, %v1247_v39 }
 0x465   :  { %1706 = vtanh.f32 %v2818_v41  ;;  %v1252_v48 = vsel %vm1251_vm6, %v1703_v19, %v1248_v42 }
 0x466   :  { %v1257_v63 = vsel %vm1254_vm7, %v1256_v56, %v1252_v48  ;;  %v3138_v48 = vld [vmem:[#allocation60_spill] sm:$0xff] }
 0x46b   :  { %v1707_v47 = vpop.eup %1706 }
 0x46c   :  { %v1263_v14 = vmul.f32 %v1707_v47, %v1257_v63  ;;  %v3139_v47 = vld [vmem:[#allocation61_spill] sm:$0xff] }
 0x46e   :  { %1280 = vmatmul.f32.vlgmr.msrb.gmra.mxu0 %v1263_v14  ;;  %1300 = vmatmul.f32.vlgmr.msrb.gmra.mxu1 %v1263_v14 }
 0x46f   :  { %1320 = vmatmul.f32.vlgmr.msrb.gmra.mxu2 %v1263_v14  ;;  %1340 = vmatmul.f32.vlgmr.msrb.gmra.mxu3 %v1263_v14 }
 0x4eb   :  { %v1281_v26 = vpop.f32.mrf.mxu0  ;;  %v1301_v58 = vpop.f32.mrf.mxu1 }
 0x4ec   :  { %v1344_v51 = vadd.f32 %v1281_v26, %v3134_v53  ;;  %v1345_v50 = vadd.f32 %v1301_v58, %v3135_v1  ;;  %v3140_v53 = vld [vmem:[#allocation63_spill] sm:$0xff] }
 0x4ee   :  { %v1596_v45 = vmul.f32 -1.442695, %v1344_v51  ;;  %v1597_v46 = vmul.f32 -1.442695, %v1345_v50 }
 0x4f0   :  { %1708 = vpow2.f32 %v1596_v45 }
 0x4f1   :  { %1710 = vpow2.f32 %v1597_v46 }
 0x4f2   :  { %v1341_v0 = vpop.f32.mrf.mxu3  ;;  %v1321_v59 = vpop.f32.mrf.mxu2 }
 0x4f3   :  { %v1347_v27 = vadd.f32 %v1341_v0, %v3136_v52  ;;  %v1346_v13 = vadd.f32 %v1321_v59, %v3137_v10 }
 0x4f5   :  { %v1598_v54 = vmul.f32 -1.442695, %v1347_v27 }
 0x4f6   :  { %v1709_v49 = vpop.eup %1708 }
 0x4f7   :  { %v1711_v57 = vpop.eup %1710  ;;  %v1351_v62 = vadd.f32 1.0, %v1709_v49  ;;  %1712 = vpow2.f32 %v1598_v54 }
 0x4f8   :  { %v1370_v55 = vadd.f32 1.0, %v1711_v57  ;;  %v3141_v57 = vld [vmem:[#allocation62_spill] sm:$0xff] }
 0x4f9   :  { %1714 = vrcp.f32 %v1351_v62  ;;  %v1363_v16 = vand.u32 2147483648, %v1351_v62  ;;  %v1361_v22 = vand.u32 2147483647, %v1351_v62  ;;  %vm1357_vm10 = vweird.f32 %v1351_v62 }
 0x4fa   :  { %1716 = vrcp.f32 %v1370_v55  ;;  %v1382_v8 = vand.u32 2147483648, %v1370_v55  ;;  %v1380_v18 = vand.u32 2147483647, %v1370_v55  ;;  %vm1376_vm11 = vweird.f32 %v1370_v55 }
 0x4fb   :  { %v1364_v21 = vor.u32 1.1754944e-38, %v1363_v16  ;;  %vm1362_vm14 = vcmp.eq.f32.partialorder %v1361_v22, 8.507059e+37 }
 0x4fc   :  { %v1383_v20 = vor.u32 1.1754944e-38, %v1382_v8  ;;  %vm1381_vm15 = vcmp.eq.f32.partialorder %v1380_v18, 8.507059e+37 }
 0x4fd   :  { %v1713_v60 = vpop.eup %1712 }
 0x4fe   :  { %v1390_v61 = vadd.f32 1.0, %v1713_v60 }
 0x4ff   :  { %v1715_v29 = vpop.eup %1714 }
 0x500   :  { %v1717_v2 = vpop.eup %1716  ;;  %v1353_v3 = vmul.f32 %v1715_v29, %v1351_v62  ;;  %1718 = vrcp.f32 %v1390_v61  ;;  %vm1358_vm8 = vweird.f32 %v1715_v29  ;;  %v1402_v35 = vand.u32 2147483648, %v1390_v61 }
 0x501   :  { %v1372_v7 = vmul.f32 %v1717_v2, %v1370_v55  ;;  %1720 = vtanh.f32 %v1346_v13  ;;  %vm1377_vm9 = vweird.f32 %v1717_v2  ;;  %vm1359_vm12 = vmor %vm1357_vm10, %vm1358_vm8  ;;  %vm1396_vm1 = vweird.f32 %v1390_v61 }
 0x502   :  { %v1354_v12 = vsub.f32 1.0, %v1353_v3  ;;  %vm1378_vm13 = vmor %vm1376_vm11, %vm1377_vm9  ;;  %v1400_v36 = vand.u32 2147483647, %v1390_v61  ;;  %v1403_v38 = vor.u32 1.1754944e-38, %v1402_v35 }
 0x503   :  { %v1373_v5 = vsub.f32 1.0, %v1372_v7 }
 0x504   :  { %v1355_v25 = vmul.f32 %v1715_v29, %v1354_v12  ;;  %vm1401_vm3 = vcmp.eq.f32.partialorder %v1400_v36, 8.507059e+37 }
 0x505   :  { %v1374_v17 = vmul.f32 %v1717_v2, %v1373_v5 }
 0x506   :  { %v1719_v24 = vpop.eup %1718  ;;  %v1356_v6 = vadd.f32 %v1715_v29, %v1355_v25 }
 0x507   :  { %v1375_v23 = vadd.f32 %v1717_v2, %v1374_v17  ;;  %v1392_v11 = vmul.f32 %v1719_v24, %v1390_v61  ;;  %v1721_v19 = vpop.eup %1720  ;;  %vm1397_vm0 = vweird.f32 %v1719_v24 }
 0x508   :  { %v1360_v15 = vsel %vm1359_vm12, %v1715_v29, %v1356_v6  ;;  %vm1398_vm2 = vmor %vm1396_vm1, %vm1397_vm0  ;;  %vm1570_vm0 = vcmask 7168  }
 0x509   :  { %v1365_v28 = vsel %vm1362_vm14, %v1364_v21, %v1360_v15  ;;  %v1379_v4 = vsel %vm1378_vm13, %v1717_v2, %v1375_v23  ;;  %v1393_v9 = vsub.f32 1.0, %v1392_v11 }
 0x50a   :  { %v1384_v40 = vsel %vm1381_vm15, %v1383_v20, %v1379_v4  ;;  %v1407_v30 = vmul.f32 %v1721_v19, %v1365_v28 }
 0x50b   :  { %v1406_v31 = vmul.f32 %v1384_v40, %v2818_v41  ;;  %v1394_v32 = vmul.f32 %v1719_v24, %v1393_v9 }
 0x50d   :  { %v2826_v33 = vadd.f32 %v1407_v30, %v1406_v31  ;;  %v1395_v34 = vadd.f32 %v1719_v24, %v1394_v32  ;;  %v1610_v32 = vld [vmem:[%s2844_s4] ss:$0 sm:$0xff] }
 0x50f   :  { %1722 = vtanh.f32 %v2826_v33  ;;  %v1399_v37 = vsel %vm1398_vm2, %v1719_v24, %v1395_v34 }
 0x510   :  { %v1404_v42 = vsel %vm1401_vm3, %v1403_v38, %v1399_v37 }
 0x515   :  { %v1723_v39 = vpop.eup %1722 }
 0x516   :  { %v1410_v43 = vmul.f32 %v1723_v39, %v1404_v42 }
 0x518   :  { %1427 = vmatmul.f32.vlgmr.msra.gmra.mxu0 %v1410_v43  ;;  %1447 = vmatmul.f32.vlgmr.msra.gmra.mxu1 %v1410_v43 }
 0x519   :  { %1467 = vmatmul.f32.vlgmr.msra.gmra.mxu2 %v1410_v43  ;;  %1487 = vmatmul.f32.vlgmr.msra.gmra.mxu3 %v1410_v43 }
 0x595   :  { %v1428_v41 = vpop.f32.mrf.mxu0  ;;  %v1448_v44 = vpop.f32.mrf.mxu1 }
 0x596   :  { %v1491_v56 = vadd.f32 %v1428_v41, %v3138_v48  ;;  %v1492_v63 = vadd.f32 %v1448_v44, %v3139_v47 }
 0x598   :  { %v1599_v14 = vmul.f32 -1.442695, %v1491_v56  ;;  %v1600_v26 = vmul.f32 -1.442695, %v1492_v63 }
 0x59a   :  { %1724 = vpow2.f32 %v1599_v14 }
 0x59b   :  { %1726 = vpow2.f32 %v1600_v26 }
 0x59c   :  { %v1488_v58 = vpop.f32.mrf.mxu3  ;;  %v1468_v52 = vpop.f32.mrf.mxu2 }
 0x59d   :  { %v1494_v51 = vadd.f32 %v1488_v58, %v3140_v53  ;;  %v1493_v62 = vadd.f32 %v1468_v52, %v3141_v57 }
 0x59f   :  { %v1601_v1 = vmul.f32 -1.442695, %v1494_v51 }
 0x5a0   :  { %v1725_v50 = vpop.eup %1724 }
 0x5a1   :  { %v1727_v45 = vpop.eup %1726  ;;  %v1498_v46 = vadd.f32 1.0, %v1725_v50  ;;  %1728 = vpow2.f32 %v1601_v1 }
 0x5a2   :  { %v1517_v0 = vadd.f32 1.0, %v1727_v45 }
 0x5a3   :  { %1730 = vrcp.f32 %v1498_v46  ;;  %v1510_v10 = vand.u32 2147483648, %v1498_v46  ;;  %v1508_v3 = vand.u32 2147483647, %v1498_v46  ;;  %vm1504_vm6 = vweird.f32 %v1498_v46 }
 0x5a4   :  { %1732 = vrcp.f32 %v1517_v0  ;;  %v1529_v13 = vand.u32 2147483648, %v1517_v0  ;;  %v1527_v12 = vand.u32 2147483647, %v1517_v0  ;;  %vm1523_vm7 = vweird.f32 %v1517_v0 }
 0x5a5   :  { %v1511_v8 = vor.u32 1.1754944e-38, %v1510_v10  ;;  %vm1509_vm10 = vcmp.eq.f32.partialorder %v1508_v3, 8.507059e+37 }
 0x5a6   :  { %v1530_v17 = vor.u32 1.1754944e-38, %v1529_v13  ;;  %vm1528_vm11 = vcmp.eq.f32.partialorder %v1527_v12, 8.507059e+37 }
 0x5a7   :  { %v1729_v27 = vpop.eup %1728 }
 0x5a8   :  { %v1537_v54 = vadd.f32 1.0, %v1729_v27 }
 0x5a9   :  { %v1731_v49 = vpop.eup %1730 }
 0x5aa   :  { %v1733_v55 = vpop.eup %1732  ;;  %v1500_v59 = vmul.f32 %v1731_v49, %v1498_v46  ;;  %1734 = vrcp.f32 %v1537_v54  ;;  %vm1505_vm4 = vweird.f32 %v1731_v49  ;;  %v1549_v9 = vand.u32 2147483648, %v1537_v54 }
 0x5ab   :  { %v1519_v60 = vmul.f32 %v1733_v55, %v1517_v0  ;;  %1736 = vtanh.f32 %v1493_v62  ;;  %vm1524_vm5 = vweird.f32 %v1733_v55  ;;  %vm1506_vm8 = vmor %vm1504_vm6, %vm1505_vm4  ;;  %vm1543_vm13 = vweird.f32 %v1537_v54 }
 0x5ac   :  { %v1501_v61 = vsub.f32 1.0, %v1500_v59  ;;  %vm1525_vm9 = vmor %vm1523_vm7, %vm1524_vm5  ;;  %v1547_v40 = vand.u32 2147483647, %v1537_v54  ;;  %v1550_v31 = vor.u32 1.1754944e-38, %v1549_v9 }
 0x5ad   :  { %v1520_v29 = vsub.f32 1.0, %v1519_v60 }
 0x5ae   :  { %v1502_v2 = vmul.f32 %v1731_v49, %v1501_v61  ;;  %vm1548_vm15 = vcmp.eq.f32.partialorder %v1547_v40, 8.507059e+37 }
 0x5af   :  { %v1521_v7 = vmul.f32 %v1733_v55, %v1520_v29 }
 0x5b0   :  { %v1735_v5 = vpop.eup %1734  ;;  %v1503_v16 = vadd.f32 %v1731_v49, %v1502_v2 }
 0x5b1   :  { %v1522_v25 = vadd.f32 %v1733_v55, %v1521_v7  ;;  %v1539_v22 = vmul.f32 %v1735_v5, %v1537_v54  ;;  %v1737_v24 = vpop.eup %1736  ;;  %vm1544_vm12 = vweird.f32 %v1735_v5 }
 0x5b2   :  { %v1507_v18 = vsel %vm1506_vm8, %v1731_v49, %v1503_v16  ;;  %vm1545_vm14 = vmor %vm1543_vm13, %vm1544_vm12 }
 0x5b3   :  { %v1512_v6 = vsel %vm1509_vm10, %v1511_v8, %v1507_v18  ;;  %v1526_v21 = vsel %vm1525_vm9, %v1733_v55, %v1522_v25  ;;  %v1540_v23 = vsub.f32 1.0, %v1539_v22 }
 0x5b4   :  { %v1554_v11 = vmul.f32 %v1737_v24, %v1512_v6  ;;  %v1531_v20 = vsel %vm1528_vm11, %v1530_v17, %v1526_v21 }
 0x5b5   :  { %v1541_v15 = vmul.f32 %v1735_v5, %v1540_v23  ;;  %v1553_v19 = vmul.f32 %v1531_v20, %v2826_v33  ;;  %v1611_v33 = vld [vmem:[#allocation2] ss:$0 sm:$0xff] }
 0x5b7   :  { %v1555_v28 = vadd.f32 %v1554_v11, %v1553_v19  ;;  %v1542_v4 = vadd.f32 %v1735_v5, %v1541_v15 }
 0x5b9   :  { %1738 = vtanh.f32 %v1555_v28  ;;  %v1546_v30 = vsel %vm1545_vm14, %v1735_v5, %v1542_v4 }
 0x5ba   :  { %v1551_v35 = vsel %vm1548_vm15, %v1550_v31, %v1546_v30 }
 0x5bf   :  { %v1739_v34 = vpop.eup %1738 }
 0x5c0   :  { %v1557_v36 = vmul.f32 %v1739_v34, %v1551_v35 }
 0x5c2   :  { %v1562_v37 = vmul.f32 %v1610_v32, %v1557_v36 }
 0x5c4   :  { %1563 = vadd.xlane.f32.xlu0 %v1562_v37 }
 0x637   :  { %v1564_v38 = vpop.xlane.xlu0 %1563 }
 0x638   :  { %v1569_v39 = vadd.f32 %v1611_v33, %v1564_v38 }
 0x63a   :  { %1571 = vst.msk [vmem:[%s2846_s6] sm:$0xff] %vm1570_vm0, %v1569_v39 }
 0x63b   :  { %1576 = vsyncpa [#allocation4], 1 }
 0x63c   :  { %1577 = vsyncpa [#allocation6], 1 }

</bundles_post_ra>
